<compile_context>
chip_gen: v6e
topology: v6e:2x2x1
jax: 0.10.0
libtpu: 0.0.40
codegen_flags: <defaults>
</compile_context>

<pallas_src>
import functools

import jax
import jax.numpy as jnp
from jax import lax
from jax.experimental import pallas as pl
from jax.experimental.pallas import tpu as pltpu

BN_EPS = 1e-5


# ---------------------------------------------------------------------------
# Fused Pallas kernel (one batch element per grid step)
# ---------------------------------------------------------------------------
def _att_merge_kernel(x_low_ref, x_high_ref, up_ref, masks_ref,
                      w_lh_ref, s_lh_ref, b_lh_ref,
                      w_att1_ref, s_att1_ref, b_att1_ref,
                      w_att2_ref, b_att2_ref,
                      o_ref, *, H, W, cout):
    """AttMerge forward, fully fused, in lane-dense (C, H*W) layout.

    x_low_ref : (1, Cin_low,  H*W)            f32
    x_high_ref: (1, Cin_high, Hh*Wh)          f32
    up_ref    : (Hh*Wh, H*W)                  bf16  bilinear-upsample operator
    masks_ref : (3, H*W)                      f32   W-border masks for dx = -1, 0, +1
    w_lh_ref  : (2*Cout, 9*(Cin_l+Cin_h))     bf16  block-diag fused low/high conv weight
    s_lh/b_lh : (2*Cout, 1)                   f32   folded-BN scale / bias (low ; high)
    w_att1_ref: (Chid, 9*2*Cout)              bf16
    s/b_att1  : (Chid, 1)                     f32
    w_att2_ref: (9*Chid, 1)                   f32   final Chid->1 conv taps (VPU path)
    b_att2_ref: (1, 1)                        f32
    o_ref     : (1, Cout, H*W)                f32
    """
    HW = H * W
    f32 = jnp.float32
    bf16 = jnp.bfloat16
    masks_f32 = masks_ref[...]                               # (3, HW)
    masks_b16 = masks_f32.astype(bf16)

    def im2col_3x3(x, masks):
        # x: (C, HW) -> (9*C, HW); tap-major (ky, kx) row blocks, zero halo.
        c = x.shape[0]
        pad = W + 1
        zeros = jnp.zeros((c, pad), x.dtype)
        xp = jnp.concatenate([zeros, x, zeros], axis=1)      # (C, HW + 2*(W+1))
        blocks = []
        for dy in (-1, 0, 1):
            for dx in (-1, 0, 1):
                off = pad + dy * W + dx
                blk = xp[:, off:off + HW]                    # y[:,p] = x[:,p+dy*W+dx] (zero OOB rows)
                if dx != 0:
                    blk = blk * masks[dx + 1:dx + 2, :]      # zero cols that wrapped across W
                blocks.append(blk)
        return jnp.concatenate(blocks, axis=0)

    # Branch inputs to bf16 BEFORE im2col (half-width shifts / masks).
    x_low_b = x_low_ref[0].astype(bf16)                      # (Cin_low, HW)

    # Bilinear upsample (align_corners=False) as a single bf16 matmul, f32 acc.
    x_high_up_b = jnp.dot(x_high_ref[0].astype(bf16), up_ref[...],
                          preferred_element_type=f32).astype(bf16)   # (Cin_high, HW)

    # conv_low + conv_high fused: one MXU matmul with block-diagonal weight.
    cols_lh = jnp.concatenate([im2col_3x3(x_low_b, masks_b16),
                               im2col_3x3(x_high_up_b, masks_b16)], axis=0)
    feats = jnp.dot(w_lh_ref[...], cols_lh, preferred_element_type=f32)
    feats = jnp.maximum(feats * s_lh_ref[...] + b_lh_ref[...], 0.0)  # (2*Cout, HW) = [low ; high]

    low_feat = feats[:cout]                                  # (Cout, HW) f32
    high_feat = feats[cout:]                                 # (Cout, HW) f32

    # att1: 3x3 conv on the (already concatenated) feats.  Dropout(p=0.2) is
    # identity in eval mode.
    cols_att1 = im2col_3x3(feats.astype(bf16), masks_b16)
    hid = jnp.dot(w_att1_ref[...], cols_att1, preferred_element_type=f32)
    hid = jnp.maximum(hid * s_att1_ref[...] + b_att1_ref[...], 0.0)  # (Chid, HW)

    # att2: Chid -> 1 conv on VPU (per-channel multiply) + sublane reduce (XLU);
    # sigmoid on the EUP.
    logit = jnp.sum(im2col_3x3(hid, masks_f32) * w_att2_ref[...],
                    axis=0, keepdims=True)                   # (1, HW)
    ca = jax.nn.sigmoid(logit + b_att2_ref[...])             # (1, HW)

    # low*ca + high*(1-ca) == high + (low-high)*ca  (one fewer multiply).
    o_ref[0] = (high_feat + (low_feat - high_feat) * ca).astype(o_ref.dtype)


# ---------------------------------------------------------------------------
# Wrapper
# ---------------------------------------------------------------------------
def _upsample_matrix(lo, li, scale):
    """1-D interpolation matrix of nn.Upsample(bilinear, align_corners=False): (lo, li)."""
    src = (jnp.arange(lo, dtype=jnp.float32) + 0.5) / scale - 0.5
    src = jnp.clip(src, 0.0, li - 1.0)
    i0 = jnp.floor(src).astype(jnp.int32)
    i1 = jnp.minimum(i0 + 1, li - 1)
    frac = src - i0.astype(jnp.float32)
    return (jax.nn.one_hot(i0, li, dtype=jnp.float32) * (1.0 - frac)[:, None]
            + jax.nn.one_hot(i1, li, dtype=jnp.float32) * frac[:, None])


def att_merge_forward(params, x_low_nchw, x_high_nchw, scale_factor):
    N, cin_low, H, W = x_low_nchw.shape
    _, cin_high, Hh, Wh = x_high_nchw.shape
    assert H == Hh * scale_factor and W == Wh * scale_factor
    cout = params["low"]["w"].shape[-1]
    chid = params["att1"]["w"].shape[-1]
    HW, HhWh = H * W, Hh * Wh

    # NCHW -> (N, C, H*W): free reshape; H*W lands on the lane axis (lane-dense).
    x_low = x_low_nchw.reshape(N, cin_low, HW)
    x_high = x_high_nchw.reshape(N, cin_high, HhWh)

    # Bilinear-upsample operator on the flattened spatial axis.
    up = jnp.kron(_upsample_matrix(H, Hh, scale_factor),
                  _upsample_matrix(W, Wh, scale_factor)).T.astype(jnp.bfloat16)  # (HhWh, HW)

    # Border masks for the in-kernel 3x3 halo (dx = -1, 0, +1).
    col = jnp.arange(HW, dtype=jnp.int32) % W
    masks = jnp.stack([(col != 0).astype(jnp.float32),
                       jnp.ones((HW,), jnp.float32),
                       (col != W - 1).astype(jnp.float32)], axis=0)              # (3, HW)

    def prep_w(w):   # (3, 3, Cin, Cout) -> (Cout, 9*Cin) bf16, tap-major K order
        cin, co = w.shape[2], w.shape[3]
        return jnp.transpose(w, (3, 0, 1, 2)).reshape(co, 9 * cin).astype(jnp.bfloat16)

    def col_vec(v):
        return v.reshape(-1, 1).astype(jnp.float32)

    # Fused block-diagonal weight for conv_low + conv_high in one MXU matmul.
    w_low_p, w_high_p = prep_w(params["low"]["w"]), prep_w(params["high"]["w"])
    w_lh = jnp.concatenate(
        [jnp.concatenate([w_low_p, jnp.zeros((cout, 9 * cin_high), jnp.bfloat16)], axis=1),
         jnp.concatenate([jnp.zeros((cout, 9 * cin_low), jnp.bfloat16), w_high_p], axis=1)],
        axis=0)                                                                  # (2*Cout, 9*(Cl+Ch))
    s_lh = jnp.concatenate([col_vec(params["low"]["scale"]),
                            col_vec(params["high"]["scale"])], axis=0)           # (2*Cout, 1)
    b_lh = jnp.concatenate([col_vec(params["low"]["bias"]),
                            col_vec(params["high"]["bias"])], axis=0)

    w_att1, s_att1, b_att1 = (prep_w(params["att1"]["w"]),
                              col_vec(params["att1"]["scale"]), col_vec(params["att1"]["bias"]))
    w_att2 = params["att2"]["w"].reshape(9 * chid, 1).astype(jnp.float32)        # tap-major, matches im2col
    b_att2 = params["att2"]["b"].reshape(1, 1).astype(jnp.float32)

    kern = functools.partial(_att_merge_kernel, H=H, W=W, cout=cout)
    full2d = lambda n: (0, 0)

    out = pl.pallas_call(
        kern,
        out_shape=jax.ShapeDtypeStruct((N, cout, HW), jnp.float32),
        grid_spec=pltpu.PrefetchScalarGridSpec(
            num_scalar_prefetch=0,
            grid=(N,),
            in_specs=[
                pl.BlockSpec((1, cin_low, HW), lambda n: (n, 0, 0)),
                pl.BlockSpec((1, cin_high, HhWh), lambda n: (n, 0, 0)),
                pl.BlockSpec((HhWh, HW), full2d),
                pl.BlockSpec((3, HW), full2d),
                pl.BlockSpec((2 * cout, 9 * (cin_low + cin_high)), full2d),
                pl.BlockSpec((2 * cout, 1), full2d),
                pl.BlockSpec((2 * cout, 1), full2d),
                pl.BlockSpec((chid, 9 * 2 * cout), full2d),
                pl.BlockSpec((chid, 1), full2d),
                pl.BlockSpec((chid, 1), full2d),
                pl.BlockSpec((9 * chid, 1), full2d),
                pl.BlockSpec((1, 1), full2d),
            ],
            out_specs=pl.BlockSpec((1, cout, HW), lambda n: (n, 0, 0)),
        ),
        compiler_params=pltpu.CompilerParams(
            dimension_semantics=("parallel",),            # megacore / v7x dual-TC over batch
            vmem_limit_bytes=32 * 1024 * 1024,            # safe on v5e/v6e/v7x; usage is tiny
        ),
    )(x_low, x_high, up, masks,
      w_lh, s_lh, b_lh,
      w_att1, s_att1, b_att1,
      w_att2, b_att2)

    return out.reshape(N, cout, H, W)                     # already NCHW


# ---------------------------------------------------------------------------
# Synthetic parameter init (BN folded into scale/bias)
# ---------------------------------------------------------------------------
def init_params(key, cin_low, cin_high, cout):
    ks = jax.random.split(key, 4)

    def conv_bn(k, cin, cout_):
        kw, kg, kb, km, kv = jax.random.split(k, 5)
        w = jax.random.normal(kw, (3, 3, cin, cout_), jnp.float32) / jnp.sqrt(9.0 * cin)
        gamma = 1.0 + 0.1 * jax.random.normal(kg, (cout_,), jnp.float32)
        beta = 0.1 * jax.random.normal(kb, (cout_,), jnp.float32)
        mean = 0.1 * jax.random.normal(km, (cout_,), jnp.float32)
        var = 1.0 + 0.1 * jax.random.uniform(kv, (cout_,), jnp.float32)
        scale = gamma / jnp.sqrt(var + BN_EPS)
        bias = beta - mean * scale
        return dict(w=w, scale=scale, bias=bias)

    kw2, kb2 = jax.random.split(ks[3])
    return {
        "low": conv_bn(ks[0], cin_low, cout),
        "high": conv_bn(ks[1], cin_high, cout),
        "att1": conv_bn(ks[2], 2 * cout, cout // 2),
        "att2": dict(
            w=jax.random.normal(kw2, (3, 3, cout // 2, 1), jnp.float32)
              / jnp.sqrt(9.0 * (cout // 2)),
            b=0.1 * jax.random.normal(kb2, (1, 1), jnp.float32),
        ),
    }


# ---------------------------------------------------------------------------
# Pure-JAX reference (correctness check)
# ---------------------------------------------------------------------------
def bilinear_upsample_ref(x, scale):
    """nn.Upsample(scale_factor, bilinear, align_corners=False) in NHWC."""
    N, H, W, C = x.shape
    Ho, Wo = H * scale, W * scale

    def src_index(out_len, in_len):
        c = (jnp.arange(out_len, dtype=jnp.float32) + 0.5) / scale - 0.5
        c = jnp.clip(c, 0.0, in_len - 1.0)
        i0 = jnp.floor(c).astype(jnp.int32)
        i1 = jnp.minimum(i0 + 1, in_len - 1)
        return i0, i1, c - i0.astype(jnp.float32)

    y0, y1, fy = src_index(Ho, H)
    x0, x1, fx = src_index(Wo, W)
    rows0 = jnp.take(x, y0, axis=1)
    rows1 = jnp.take(x, y1, axis=1)
    fy = fy.reshape(1, Ho, 1, 1)
    rows = rows0 * (1.0 - fy) + rows1 * fy
    cols0 = jnp.take(rows, x0, axis=2)
    cols1 = jnp.take(rows, x1, axis=2)
    fx = fx.reshape(1, 1, Wo, 1)
    return cols0 * (1.0 - fx) + cols1 * fx


def _conv3x3_ref(x, w, scale, bias, relu):
    y = lax.conv_general_dilated(x, w, (1, 1), "SAME",
                                 dimension_numbers=("NHWC", "HWIO", "NHWC"))
    y = y * scale.reshape(1, 1, 1, -1) + bias.reshape(1, 1, 1, -1)
    return jnp.maximum(y, 0.0) if relu else y


def att_merge_ref(params, x_low_nchw, x_high_nchw, scale_factor):
    x_low = jnp.transpose(x_low_nchw, (0, 2, 3, 1))
    x_high = jnp.transpose(x_high_nchw, (0, 2, 3, 1))
    x_high_up = bilinear_upsample_ref(x_high, scale_factor)
    xl = _conv3x3_ref(x_low, params["low"]["w"], params["low"]["scale"],
                      params["low"]["bias"], True)
    xh = _conv3x3_ref(x_high_up, params["high"]["w"], params["high"]["scale"],
                      params["high"]["bias"], True)
    xm = jnp.concatenate([xl, xh], axis=-1)
    hid = _conv3x3_ref(xm, params["att1"]["w"], params["att1"]["scale"],
                       params["att1"]["bias"], True)
    logit = lax.conv_general_dilated(hid, params["att2"]["w"], (1, 1), "SAME",
                                     dimension_numbers=("NHWC", "HWIO", "NHWC"))
    ca = jax.nn.sigmoid(logit + params["att2"]["b"].reshape(()))
    out = xl * ca + xh * (1.0 - ca)
    return jnp.transpose(out, (0, 3, 1, 2))


# ---------------------------------------------------------------------------
if __name__ == "__main__":
    B, CIN_LOW, CIN_HIGH, COUT, SCALE = 2, 8, 16, 8, 2
    H_LOW = W_LOW = 16
    H_HIGH, W_HIGH = H_LOW // SCALE, W_LOW // SCALE

    key = jax.random.PRNGKey(0)
    k1, k2, k3 = jax.random.split(key, 3)
    x_low = jax.random.normal(k1, (B, CIN_LOW, H_LOW, W_LOW), jnp.float32)
    x_high = jax.random.normal(k2, (B, CIN_HIGH, H_HIGH, W_HIGH), jnp.float32)
    params = init_params(k3, CIN_LOW, CIN_HIGH, COUT)

    fwd = jax.jit(functools.partial(att_merge_forward, scale_factor=SCALE))
    out = jax.block_until_ready(fwd(params, x_low, x_high))

    ref = att_merge_ref(params, x_low, x_high, SCALE)
    assert out.shape == (B, COUT, H_LOW, W_LOW), out.shape
    # bf16 MXU operands -> loosened tolerance vs the f32 reference.
    assert jnp.allclose(out, ref, atol=5e-2, rtol=5e-2), float(jnp.max(jnp.abs(out - ref)))
    print("KERNEL_OK")
</pallas_src>

<mosaic_0001>
module attributes {stable_mosaic.version = 11 : i64} {
  func.func @_att_merge_kernel(%arg0: i32, %arg1: memref<1x8x256xf32, #tpu.memory_space<vmem>>, %arg2: memref<1x16x64xf32, #tpu.memory_space<vmem>>, %arg3: memref<64x256xbf16, #tpu.memory_space<vmem>>, %arg4: memref<3x256xf32, #tpu.memory_space<vmem>>, %arg5: memref<16x216xbf16, #tpu.memory_space<vmem>>, %arg6: memref<16x1xf32, #tpu.memory_space<vmem>>, %arg7: memref<16x1xf32, #tpu.memory_space<vmem>>, %arg8: memref<4x144xbf16, #tpu.memory_space<vmem>>, %arg9: memref<4x1xf32, #tpu.memory_space<vmem>>, %arg10: memref<4x1xf32, #tpu.memory_space<vmem>>, %arg11: memref<36x1xf32, #tpu.memory_space<vmem>>, %arg12: memref<1x1xf32, #tpu.memory_space<vmem>>, %arg13: memref<1x8x256xf32, #tpu.memory_space<vmem>>) attributes {dimension_semantics = [#tpu.dimension_semantics<parallel>], iteration_bounds = array<i64: 2>, scalar_prefetch = 0 : i64, scratch_operands = 0 : i64, tpu.core_type = #tpu.core_type<tc>, window_params = [{transform_indices = @transform_0, window_bounds = array<i64: 1, 8, 256>}, {transform_indices = @transform_1, window_bounds = array<i64: 1, 16, 64>}, {pipeline_mode = #tpu.pipeline_mode<synchronous>, transform_indices = @transform_2, window_bounds = array<i64: 64, 256>}, {pipeline_mode = #tpu.pipeline_mode<synchronous>, transform_indices = @transform_3, window_bounds = array<i64: 3, 256>}, {pipeline_mode = #tpu.pipeline_mode<synchronous>, transform_indices = @transform_4, window_bounds = array<i64: 16, 216>}, {pipeline_mode = #tpu.pipeline_mode<synchronous>, transform_indices = @transform_5, window_bounds = array<i64: 16, 1>}, {pipeline_mode = #tpu.pipeline_mode<synchronous>, transform_indices = @transform_6, window_bounds = array<i64: 16, 1>}, {pipeline_mode = #tpu.pipeline_mode<synchronous>, transform_indices = @transform_7, window_bounds = array<i64: 4, 144>}, {pipeline_mode = #tpu.pipeline_mode<synchronous>, transform_indices = @transform_8, window_bounds = array<i64: 4, 1>}, {pipeline_mode = #tpu.pipeline_mode<synchronous>, transform_indices = @transform_9, window_bounds = array<i64: 4, 1>}, {pipeline_mode = #tpu.pipeline_mode<synchronous>, transform_indices = @transform_10, window_bounds = array<i64: 36, 1>}, {pipeline_mode = #tpu.pipeline_mode<synchronous>, transform_indices = @transform_11, window_bounds = array<i64: 1, 1>}, {transform_indices = @transform_12, window_bounds = array<i64: 1, 8, 256>}]} {
    %c0 = arith.constant 0 : index
    %c0_0 = arith.constant 0 : index
    %0 = vector.load %arg4[%c0, %c0_0] : memref<3x256xf32, #tpu.memory_space<vmem>>, vector<3x256xf32>
    %1 = arith.truncf %0 : vector<3x256xf32> to vector<3x256xbf16>
    %c0_1 = arith.constant 0 : index
    %c0_2 = arith.constant 0 : index
    %c0_3 = arith.constant 0 : index
    %2 = vector.load %arg1[%c0_1, %c0_2, %c0_3] : memref<1x8x256xf32, #tpu.memory_space<vmem>>, vector<1x8x256xf32>
    %3 = vector.shape_cast %2 : vector<1x8x256xf32> to vector<8x256xf32>
    %4 = arith.truncf %3 : vector<8x256xf32> to vector<8x256xbf16>
    %c0_4 = arith.constant 0 : index
    %c0_5 = arith.constant 0 : index
    %c0_6 = arith.constant 0 : index
    %5 = vector.load %arg2[%c0_4, %c0_5, %c0_6] : memref<1x16x64xf32, #tpu.memory_space<vmem>>, vector<1x16x64xf32>
    %6 = vector.shape_cast %5 : vector<1x16x64xf32> to vector<16x64xf32>
    %7 = arith.truncf %6 : vector<16x64xf32> to vector<16x64xbf16>
    %c0_7 = arith.constant 0 : index
    %c0_8 = arith.constant 0 : index
    %8 = vector.load %arg3[%c0_7, %c0_8] : memref<64x256xbf16, #tpu.memory_space<vmem>>, vector<64x256xbf16>
    %cst = arith.constant dense<0.000000e+00> : vector<16x256xf32>
    %9 = tpu.matmul %7, %8, %cst {dimension_numbers = #tpu.dot_dimension_numbers<[1], [0], [0], [1], [0, 0, 1, 1], [], []>} : vector<16x64xbf16>, vector<64x256xbf16>, vector<16x256xf32> -> vector<16x256xf32>
    %10 = arith.truncf %9 : vector<16x256xf32> to vector<16x256xbf16>
    %cst_9 = arith.constant 0.000000e+00 : bf16
    %11 = vector.broadcast %cst_9 : bf16 to vector<8x17xbf16>
    %12 = tpu.concatenate %11, %4, %11 in 1 : vector<8x17xbf16>, vector<8x256xbf16>, vector<8x17xbf16> -> vector<8x290xbf16>
    %13 = vector.extract_strided_slice %12 {offsets = [0, 0], sizes = [8, 256], strides = [1, 1]} : vector<8x290xbf16> to vector<8x256xbf16>
    %14 = vector.extract_strided_slice %1 {offsets = [0, 0], sizes = [1, 256], strides = [1, 1]} : vector<3x256xbf16> to vector<1x256xbf16>
    %15 = vector.broadcast %14 : vector<1x256xbf16> to vector<8x256xbf16>
    %16 = arith.mulf %13, %15 : vector<8x256xbf16>
    %17 = vector.extract_strided_slice %12 {offsets = [0, 1], sizes = [8, 256], strides = [1, 1]} : vector<8x290xbf16> to vector<8x256xbf16>
    %18 = vector.extract_strided_slice %12 {offsets = [0, 2], sizes = [8, 256], strides = [1, 1]} : vector<8x290xbf16> to vector<8x256xbf16>
    %19 = vector.extract_strided_slice %1 {offsets = [2, 0], sizes = [1, 256], strides = [1, 1]} : vector<3x256xbf16> to vector<1x256xbf16>
    %20 = vector.broadcast %19 : vector<1x256xbf16> to vector<8x256xbf16>
    %21 = arith.mulf %18, %20 : vector<8x256xbf16>
    %22 = vector.extract_strided_slice %12 {offsets = [0, 16], sizes = [8, 256], strides = [1, 1]} : vector<8x290xbf16> to vector<8x256xbf16>
    %23 = vector.extract_strided_slice %1 {offsets = [0, 0], sizes = [1, 256], strides = [1, 1]} : vector<3x256xbf16> to vector<1x256xbf16>
    %24 = vector.broadcast %23 : vector<1x256xbf16> to vector<8x256xbf16>
    %25 = arith.mulf %22, %24 : vector<8x256xbf16>
    %26 = vector.extract_strided_slice %12 {offsets = [0, 17], sizes = [8, 256], strides = [1, 1]} : vector<8x290xbf16> to vector<8x256xbf16>
    %27 = vector.extract_strided_slice %12 {offsets = [0, 18], sizes = [8, 256], strides = [1, 1]} : vector<8x290xbf16> to vector<8x256xbf16>
    %28 = vector.extract_strided_slice %1 {offsets = [2, 0], sizes = [1, 256], strides = [1, 1]} : vector<3x256xbf16> to vector<1x256xbf16>
    %29 = vector.broadcast %28 : vector<1x256xbf16> to vector<8x256xbf16>
    %30 = arith.mulf %27, %29 : vector<8x256xbf16>
    %31 = vector.extract_strided_slice %12 {offsets = [0, 32], sizes = [8, 256], strides = [1, 1]} : vector<8x290xbf16> to vector<8x256xbf16>
    %32 = vector.extract_strided_slice %1 {offsets = [0, 0], sizes = [1, 256], strides = [1, 1]} : vector<3x256xbf16> to vector<1x256xbf16>
    %33 = vector.broadcast %32 : vector<1x256xbf16> to vector<8x256xbf16>
    %34 = arith.mulf %31, %33 : vector<8x256xbf16>
    %35 = vector.extract_strided_slice %12 {offsets = [0, 33], sizes = [8, 256], strides = [1, 1]} : vector<8x290xbf16> to vector<8x256xbf16>
    %36 = vector.extract_strided_slice %12 {offsets = [0, 34], sizes = [8, 256], strides = [1, 1]} : vector<8x290xbf16> to vector<8x256xbf16>
    %37 = vector.extract_strided_slice %1 {offsets = [2, 0], sizes = [1, 256], strides = [1, 1]} : vector<3x256xbf16> to vector<1x256xbf16>
    %38 = vector.broadcast %37 : vector<1x256xbf16> to vector<8x256xbf16>
    %39 = arith.mulf %36, %38 : vector<8x256xbf16>
    %40 = tpu.concatenate %16, %17, %21, %25, %26, %30, %34, %35, %39 in 0 : vector<8x256xbf16>, vector<8x256xbf16>, vector<8x256xbf16>, vector<8x256xbf16>, vector<8x256xbf16>, vector<8x256xbf16>, vector<8x256xbf16>, vector<8x256xbf16>, vector<8x256xbf16> -> vector<72x256xbf16>
    %cst_10 = arith.constant 0.000000e+00 : bf16
    %41 = vector.broadcast %cst_10 : bf16 to vector<16x17xbf16>
    %42 = tpu.concatenate %41, %10, %41 in 1 : vector<16x17xbf16>, vector<16x256xbf16>, vector<16x17xbf16> -> vector<16x290xbf16>
    %43 = vector.extract_strided_slice %42 {offsets = [0, 0], sizes = [16, 256], strides = [1, 1]} : vector<16x290xbf16> to vector<16x256xbf16>
    %44 = vector.extract_strided_slice %1 {offsets = [0, 0], sizes = [1, 256], strides = [1, 1]} : vector<3x256xbf16> to vector<1x256xbf16>
    %45 = vector.broadcast %44 : vector<1x256xbf16> to vector<16x256xbf16>
    %46 = arith.mulf %43, %45 : vector<16x256xbf16>
    %47 = vector.extract_strided_slice %42 {offsets = [0, 1], sizes = [16, 256], strides = [1, 1]} : vector<16x290xbf16> to vector<16x256xbf16>
    %48 = vector.extract_strided_slice %42 {offsets = [0, 2], sizes = [16, 256], strides = [1, 1]} : vector<16x290xbf16> to vector<16x256xbf16>
    %49 = vector.extract_strided_slice %1 {offsets = [2, 0], sizes = [1, 256], strides = [1, 1]} : vector<3x256xbf16> to vector<1x256xbf16>
    %50 = vector.broadcast %49 : vector<1x256xbf16> to vector<16x256xbf16>
    %51 = arith.mulf %48, %50 : vector<16x256xbf16>
    %52 = vector.extract_strided_slice %42 {offsets = [0, 16], sizes = [16, 256], strides = [1, 1]} : vector<16x290xbf16> to vector<16x256xbf16>
    %53 = vector.extract_strided_slice %1 {offsets = [0, 0], sizes = [1, 256], strides = [1, 1]} : vector<3x256xbf16> to vector<1x256xbf16>
    %54 = vector.broadcast %53 : vector<1x256xbf16> to vector<16x256xbf16>
    %55 = arith.mulf %52, %54 : vector<16x256xbf16>
    %56 = vector.extract_strided_slice %42 {offsets = [0, 17], sizes = [16, 256], strides = [1, 1]} : vector<16x290xbf16> to vector<16x256xbf16>
    %57 = vector.extract_strided_slice %42 {offsets = [0, 18], sizes = [16, 256], strides = [1, 1]} : vector<16x290xbf16> to vector<16x256xbf16>
    %58 = vector.extract_strided_slice %1 {offsets = [2, 0], sizes = [1, 256], strides = [1, 1]} : vector<3x256xbf16> to vector<1x256xbf16>
    %59 = vector.broadcast %58 : vector<1x256xbf16> to vector<16x256xbf16>
    %60 = arith.mulf %57, %59 : vector<16x256xbf16>
    %61 = vector.extract_strided_slice %42 {offsets = [0, 32], sizes = [16, 256], strides = [1, 1]} : vector<16x290xbf16> to vector<16x256xbf16>
    %62 = vector.extract_strided_slice %1 {offsets = [0, 0], sizes = [1, 256], strides = [1, 1]} : vector<3x256xbf16> to vector<1x256xbf16>
    %63 = vector.broadcast %62 : vector<1x256xbf16> to vector<16x256xbf16>
    %64 = arith.mulf %61, %63 : vector<16x256xbf16>
    %65 = vector.extract_strided_slice %42 {offsets = [0, 33], sizes = [16, 256], strides = [1, 1]} : vector<16x290xbf16> to vector<16x256xbf16>
    %66 = vector.extract_strided_slice %42 {offsets = [0, 34], sizes = [16, 256], strides = [1, 1]} : vector<16x290xbf16> to vector<16x256xbf16>
    %67 = vector.extract_strided_slice %1 {offsets = [2, 0], sizes = [1, 256], strides = [1, 1]} : vector<3x256xbf16> to vector<1x256xbf16>
    %68 = vector.broadcast %67 : vector<1x256xbf16> to vector<16x256xbf16>
    %69 = arith.mulf %66, %68 : vector<16x256xbf16>
    %70 = tpu.concatenate %46, %47, %51, %55, %56, %60, %64, %65, %69 in 0 : vector<16x256xbf16>, vector<16x256xbf16>, vector<16x256xbf16>, vector<16x256xbf16>, vector<16x256xbf16>, vector<16x256xbf16>, vector<16x256xbf16>, vector<16x256xbf16>, vector<16x256xbf16> -> vector<144x256xbf16>
    %71 = tpu.concatenate %40, %70 in 0 : vector<72x256xbf16>, vector<144x256xbf16> -> vector<216x256xbf16>
    %c0_11 = arith.constant 0 : index
    %c0_12 = arith.constant 0 : index
    %72 = vector.load %arg5[%c0_11, %c0_12] : memref<16x216xbf16, #tpu.memory_space<vmem>>, vector<16x216xbf16>
    %cst_13 = arith.constant dense<0.000000e+00> : vector<16x256xf32>
    %73 = tpu.matmul %72, %71, %cst_13 {dimension_numbers = #tpu.dot_dimension_numbers<[1], [0], [0], [1], [0, 0, 1, 1], [], []>} : vector<16x216xbf16>, vector<216x256xbf16>, vector<16x256xf32> -> vector<16x256xf32>
    %c0_14 = arith.constant 0 : index
    %c0_15 = arith.constant 0 : index
    %74 = vector.load %arg6[%c0_14, %c0_15] : memref<16x1xf32, #tpu.memory_space<vmem>>, vector<16x1xf32>
    %75 = vector.broadcast %74 : vector<16x1xf32> to vector<16x256xf32>
    %76 = arith.mulf %73, %75 : vector<16x256xf32>
    %c0_16 = arith.constant 0 : index
    %c0_17 = arith.constant 0 : index
    %77 = vector.load %arg7[%c0_16, %c0_17] : memref<16x1xf32, #tpu.memory_space<vmem>>, vector<16x1xf32>
    %78 = vector.broadcast %77 : vector<16x1xf32> to vector<16x256xf32>
    %79 = arith.addf %76, %78 : vector<16x256xf32>
    %cst_18 = arith.constant 0.000000e+00 : f32
    %80 = vector.broadcast %cst_18 : f32 to vector<16x256xf32>
    %81 = arith.maximumf %79, %80 : vector<16x256xf32>
    %82 = vector.extract_strided_slice %81 {offsets = [0, 0], sizes = [8, 256], strides = [1, 1]} : vector<16x256xf32> to vector<8x256xf32>
    %83 = vector.extract_strided_slice %81 {offsets = [8, 0], sizes = [8, 256], strides = [1, 1]} : vector<16x256xf32> to vector<8x256xf32>
    %84 = arith.truncf %81 : vector<16x256xf32> to vector<16x256xbf16>
    %cst_19 = arith.constant 0.000000e+00 : bf16
    %85 = vector.broadcast %cst_19 : bf16 to vector<16x17xbf16>
    %86 = tpu.concatenate %85, %84, %85 in 1 : vector<16x17xbf16>, vector<16x256xbf16>, vector<16x17xbf16> -> vector<16x290xbf16>
    %87 = vector.extract_strided_slice %86 {offsets = [0, 0], sizes = [16, 256], strides = [1, 1]} : vector<16x290xbf16> to vector<16x256xbf16>
    %88 = vector.extract_strided_slice %1 {offsets = [0, 0], sizes = [1, 256], strides = [1, 1]} : vector<3x256xbf16> to vector<1x256xbf16>
    %89 = vector.broadcast %88 : vector<1x256xbf16> to vector<16x256xbf16>
    %90 = arith.mulf %87, %89 : vector<16x256xbf16>
    %91 = vector.extract_strided_slice %86 {offsets = [0, 1], sizes = [16, 256], strides = [1, 1]} : vector<16x290xbf16> to vector<16x256xbf16>
    %92 = vector.extract_strided_slice %86 {offsets = [0, 2], sizes = [16, 256], strides = [1, 1]} : vector<16x290xbf16> to vector<16x256xbf16>
    %93 = vector.extract_strided_slice %1 {offsets = [2, 0], sizes = [1, 256], strides = [1, 1]} : vector<3x256xbf16> to vector<1x256xbf16>
    %94 = vector.broadcast %93 : vector<1x256xbf16> to vector<16x256xbf16>
    %95 = arith.mulf %92, %94 : vector<16x256xbf16>
    %96 = vector.extract_strided_slice %86 {offsets = [0, 16], sizes = [16, 256], strides = [1, 1]} : vector<16x290xbf16> to vector<16x256xbf16>
    %97 = vector.extract_strided_slice %1 {offsets = [0, 0], sizes = [1, 256], strides = [1, 1]} : vector<3x256xbf16> to vector<1x256xbf16>
    %98 = vector.broadcast %97 : vector<1x256xbf16> to vector<16x256xbf16>
    %99 = arith.mulf %96, %98 : vector<16x256xbf16>
    %100 = vector.extract_strided_slice %86 {offsets = [0, 17], sizes = [16, 256], strides = [1, 1]} : vector<16x290xbf16> to vector<16x256xbf16>
    %101 = vector.extract_strided_slice %86 {offsets = [0, 18], sizes = [16, 256], strides = [1, 1]} : vector<16x290xbf16> to vector<16x256xbf16>
    %102 = vector.extract_strided_slice %1 {offsets = [2, 0], sizes = [1, 256], strides = [1, 1]} : vector<3x256xbf16> to vector<1x256xbf16>
    %103 = vector.broadcast %102 : vector<1x256xbf16> to vector<16x256xbf16>
    %104 = arith.mulf %101, %103 : vector<16x256xbf16>
    %105 = vector.extract_strided_slice %86 {offsets = [0, 32], sizes = [16, 256], strides = [1, 1]} : vector<16x290xbf16> to vector<16x256xbf16>
    %106 = vector.extract_strided_slice %1 {offsets = [0, 0], sizes = [1, 256], strides = [1, 1]} : vector<3x256xbf16> to vector<1x256xbf16>
    %107 = vector.broadcast %106 : vector<1x256xbf16> to vector<16x256xbf16>
    %108 = arith.mulf %105, %107 : vector<16x256xbf16>
    %109 = vector.extract_strided_slice %86 {offsets = [0, 33], sizes = [16, 256], strides = [1, 1]} : vector<16x290xbf16> to vector<16x256xbf16>
    %110 = vector.extract_strided_slice %86 {offsets = [0, 34], sizes = [16, 256], strides = [1, 1]} : vector<16x290xbf16> to vector<16x256xbf16>
    %111 = vector.extract_strided_slice %1 {offsets = [2, 0], sizes = [1, 256], strides = [1, 1]} : vector<3x256xbf16> to vector<1x256xbf16>
    %112 = vector.broadcast %111 : vector<1x256xbf16> to vector<16x256xbf16>
    %113 = arith.mulf %110, %112 : vector<16x256xbf16>
    %114 = tpu.concatenate %90, %91, %95, %99, %100, %104, %108, %109, %113 in 0 : vector<16x256xbf16>, vector<16x256xbf16>, vector<16x256xbf16>, vector<16x256xbf16>, vector<16x256xbf16>, vector<16x256xbf16>, vector<16x256xbf16>, vector<16x256xbf16>, vector<16x256xbf16> -> vector<144x256xbf16>
    %c0_20 = arith.constant 0 : index
    %c0_21 = arith.constant 0 : index
    %115 = vector.load %arg8[%c0_20, %c0_21] : memref<4x144xbf16, #tpu.memory_space<vmem>>, vector<4x144xbf16>
    %cst_22 = arith.constant dense<0.000000e+00> : vector<4x256xf32>
    %116 = tpu.matmul %115, %114, %cst_22 {dimension_numbers = #tpu.dot_dimension_numbers<[1], [0], [0], [1], [0, 0, 1, 1], [], []>} : vector<4x144xbf16>, vector<144x256xbf16>, vector<4x256xf32> -> vector<4x256xf32>
    %c0_23 = arith.constant 0 : index
    %c0_24 = arith.constant 0 : index
    %117 = vector.load %arg9[%c0_23, %c0_24] : memref<4x1xf32, #tpu.memory_space<vmem>>, vector<4x1xf32>
    %118 = vector.broadcast %117 : vector<4x1xf32> to vector<4x256xf32>
    %119 = arith.mulf %116, %118 : vector<4x256xf32>
    %c0_25 = arith.constant 0 : index
    %c0_26 = arith.constant 0 : index
    %120 = vector.load %arg10[%c0_25, %c0_26] : memref<4x1xf32, #tpu.memory_space<vmem>>, vector<4x1xf32>
    %121 = vector.broadcast %120 : vector<4x1xf32> to vector<4x256xf32>
    %122 = arith.addf %119, %121 : vector<4x256xf32>
    %cst_27 = arith.constant 0.000000e+00 : f32
    %123 = vector.broadcast %cst_27 : f32 to vector<4x256xf32>
    %124 = arith.maximumf %122, %123 : vector<4x256xf32>
    %cst_28 = arith.constant 0.000000e+00 : f32
    %125 = vector.broadcast %cst_28 : f32 to vector<4x17xf32>
    %126 = tpu.concatenate %125, %124, %125 in 1 : vector<4x17xf32>, vector<4x256xf32>, vector<4x17xf32> -> vector<4x290xf32>
    %127 = vector.extract_strided_slice %126 {offsets = [0, 0], sizes = [4, 256], strides = [1, 1]} : vector<4x290xf32> to vector<4x256xf32>
    %128 = vector.extract_strided_slice %0 {offsets = [0, 0], sizes = [1, 256], strides = [1, 1]} : vector<3x256xf32> to vector<1x256xf32>
    %129 = vector.broadcast %128 : vector<1x256xf32> to vector<4x256xf32>
    %130 = arith.mulf %127, %129 : vector<4x256xf32>
    %131 = vector.extract_strided_slice %126 {offsets = [0, 1], sizes = [4, 256], strides = [1, 1]} : vector<4x290xf32> to vector<4x256xf32>
    %132 = vector.extract_strided_slice %126 {offsets = [0, 2], sizes = [4, 256], strides = [1, 1]} : vector<4x290xf32> to vector<4x256xf32>
    %133 = vector.extract_strided_slice %0 {offsets = [2, 0], sizes = [1, 256], strides = [1, 1]} : vector<3x256xf32> to vector<1x256xf32>
    %134 = vector.broadcast %133 : vector<1x256xf32> to vector<4x256xf32>
    %135 = arith.mulf %132, %134 : vector<4x256xf32>
    %136 = vector.extract_strided_slice %126 {offsets = [0, 16], sizes = [4, 256], strides = [1, 1]} : vector<4x290xf32> to vector<4x256xf32>
    %137 = vector.extract_strided_slice %0 {offsets = [0, 0], sizes = [1, 256], strides = [1, 1]} : vector<3x256xf32> to vector<1x256xf32>
    %138 = vector.broadcast %137 : vector<1x256xf32> to vector<4x256xf32>
    %139 = arith.mulf %136, %138 : vector<4x256xf32>
    %140 = vector.extract_strided_slice %126 {offsets = [0, 17], sizes = [4, 256], strides = [1, 1]} : vector<4x290xf32> to vector<4x256xf32>
    %141 = vector.extract_strided_slice %126 {offsets = [0, 18], sizes = [4, 256], strides = [1, 1]} : vector<4x290xf32> to vector<4x256xf32>
    %142 = vector.extract_strided_slice %0 {offsets = [2, 0], sizes = [1, 256], strides = [1, 1]} : vector<3x256xf32> to vector<1x256xf32>
    %143 = vector.broadcast %142 : vector<1x256xf32> to vector<4x256xf32>
    %144 = arith.mulf %141, %143 : vector<4x256xf32>
    %145 = vector.extract_strided_slice %126 {offsets = [0, 32], sizes = [4, 256], strides = [1, 1]} : vector<4x290xf32> to vector<4x256xf32>
    %146 = vector.extract_strided_slice %0 {offsets = [0, 0], sizes = [1, 256], strides = [1, 1]} : vector<3x256xf32> to vector<1x256xf32>
    %147 = vector.broadcast %146 : vector<1x256xf32> to vector<4x256xf32>
    %148 = arith.mulf %145, %147 : vector<4x256xf32>
    %149 = vector.extract_strided_slice %126 {offsets = [0, 33], sizes = [4, 256], strides = [1, 1]} : vector<4x290xf32> to vector<4x256xf32>
    %150 = vector.extract_strided_slice %126 {offsets = [0, 34], sizes = [4, 256], strides = [1, 1]} : vector<4x290xf32> to vector<4x256xf32>
    %151 = vector.extract_strided_slice %0 {offsets = [2, 0], sizes = [1, 256], strides = [1, 1]} : vector<3x256xf32> to vector<1x256xf32>
    %152 = vector.broadcast %151 : vector<1x256xf32> to vector<4x256xf32>
    %153 = arith.mulf %150, %152 : vector<4x256xf32>
    %154 = tpu.concatenate %130, %131, %135, %139, %140, %144, %148, %149, %153 in 0 : vector<4x256xf32>, vector<4x256xf32>, vector<4x256xf32>, vector<4x256xf32>, vector<4x256xf32>, vector<4x256xf32>, vector<4x256xf32>, vector<4x256xf32>, vector<4x256xf32> -> vector<36x256xf32>
    %c0_29 = arith.constant 0 : index
    %c0_30 = arith.constant 0 : index
    %155 = vector.load %arg11[%c0_29, %c0_30] : memref<36x1xf32, #tpu.memory_space<vmem>>, vector<36x1xf32>
    %156 = vector.broadcast %155 : vector<36x1xf32> to vector<36x256xf32>
    %157 = arith.mulf %154, %156 : vector<36x256xf32>
    %cst_31 = arith.constant dense<0.000000e+00> : vector<256xf32>
    %158 = vector.multi_reduction <add>, %157, %cst_31 [0] : vector<36x256xf32> to vector<256xf32>
    %159 = vector.shape_cast %158 : vector<256xf32> to vector<1x256xf32>
    %c0_32 = arith.constant 0 : index
    %c0_33 = arith.constant 0 : index
    %160 = vector.load %arg12[%c0_32, %c0_33] : memref<1x1xf32, #tpu.memory_space<vmem>>, vector<1x1xf32>
    %161 = vector.broadcast %160 : vector<1x1xf32> to vector<1x256xf32>
    %162 = arith.addf %159, %161 : vector<1x256xf32>
    %163 = arith.negf %162 : vector<1x256xf32>
    %164 = math.exp %163 : vector<1x256xf32>
    %cst_34 = arith.constant 1.000000e+00 : f32
    %165 = vector.broadcast %cst_34 : f32 to vector<1x256xf32>
    %166 = arith.addf %165, %164 : vector<1x256xf32>
    %167 = arith.divf %165, %166 : vector<1x256xf32>
    %168 = arith.subf %82, %83 : vector<8x256xf32>
    %169 = vector.broadcast %167 : vector<1x256xf32> to vector<8x256xf32>
    %170 = arith.mulf %168, %169 : vector<8x256xf32>
    %171 = arith.addf %83, %170 : vector<8x256xf32>
    %c0_35 = arith.constant 0 : index
    %c0_36 = arith.constant 0 : index
    %c0_37 = arith.constant 0 : index
    %172 = vector.load %arg13[%c0_35, %c0_36, %c0_37] : memref<1x8x256xf32, #tpu.memory_space<vmem>>, vector<1x8x256xf32>
    %173 = vector.shape_cast %172 : vector<1x8x256xf32> to vector<8x256xf32>
    %174 = vector.shape_cast %171 : vector<8x256xf32> to vector<1x8x256xf32>
    tpu.vector_store %arg13[%c0_35, %c0_36, %c0_37], %174 {strides = array<i32>} : memref<1x8x256xf32, #tpu.memory_space<vmem>>, vector<1x8x256xf32>,
    return
  }
  func.func @transform_0(%arg0: i32) -> (i32, i32, i32) {
    %c0_i32 = arith.constant 0 : i32
    %c0_i32_0 = arith.constant 0 : i32
    %c0_i32_1 = arith.constant 0 : i32
    return %arg0, %c0_i32, %c0_i32_0 : i32, i32, i32
  }
  func.func @transform_1(%arg0: i32) -> (i32, i32, i32) {
    %c0_i32 = arith.constant 0 : i32
    %c0_i32_0 = arith.constant 0 : i32
    %c0_i32_1 = arith.constant 0 : i32
    return %arg0, %c0_i32, %c0_i32_0 : i32, i32, i32
  }
  func.func @transform_2(%arg0: i32) -> (i32, i32) {
    %c0_i32 = arith.constant 0 : i32
    %c0_i32_0 = arith.constant 0 : i32
    %c0_i32_1 = arith.constant 0 : i32
    return %c0_i32, %c0_i32_0 : i32, i32
  }
  func.func @transform_3(%arg0: i32) -> (i32, i32) {
    %c0_i32 = arith.constant 0 : i32
    %c0_i32_0 = arith.constant 0 : i32
    %c0_i32_1 = arith.constant 0 : i32
    return %c0_i32, %c0_i32_0 : i32, i32
  }
  func.func @transform_4(%arg0: i32) -> (i32, i32) {
    %c0_i32 = arith.constant 0 : i32
    %c0_i32_0 = arith.constant 0 : i32
    %c0_i32_1 = arith.constant 0 : i32
    return %c0_i32, %c0_i32_0 : i32, i32
  }
  func.func @transform_5(%arg0: i32) -> (i32, i32) {
    %c0_i32 = arith.constant 0 : i32
    %c0_i32_0 = arith.constant 0 : i32
    %c0_i32_1 = arith.constant 0 : i32
    return %c0_i32, %c0_i32_0 : i32, i32
  }
  func.func @transform_6(%arg0: i32) -> (i32, i32) {
    %c0_i32 = arith.constant 0 : i32
    %c0_i32_0 = arith.constant 0 : i32
    %c0_i32_1 = arith.constant 0 : i32
    return %c0_i32, %c0_i32_0 : i32, i32
  }
  func.func @transform_7(%arg0: i32) -> (i32, i32) {
    %c0_i32 = arith.constant 0 : i32
    %c0_i32_0 = arith.constant 0 : i32
    %c0_i32_1 = arith.constant 0 : i32
    return %c0_i32, %c0_i32_0 : i32, i32
  }
  func.func @transform_8(%arg0: i32) -> (i32, i32) {
    %c0_i32 = arith.constant 0 : i32
    %c0_i32_0 = arith.constant 0 : i32
    %c0_i32_1 = arith.constant 0 : i32
    return %c0_i32, %c0_i32_0 : i32, i32
  }
  func.func @transform_9(%arg0: i32) -> (i32, i32) {
    %c0_i32 = arith.constant 0 : i32
    %c0_i32_0 = arith.constant 0 : i32
    %c0_i32_1 = arith.constant 0 : i32
    return %c0_i32, %c0_i32_0 : i32, i32
  }
  func.func @transform_10(%arg0: i32) -> (i32, i32) {
    %c0_i32 = arith.constant 0 : i32
    %c0_i32_0 = arith.constant 0 : i32
    %c0_i32_1 = arith.constant 0 : i32
    return %c0_i32, %c0_i32_0 : i32, i32
  }
  func.func @transform_11(%arg0: i32) -> (i32, i32) {
    %c0_i32 = arith.constant 0 : i32
    %c0_i32_0 = arith.constant 0 : i32
    %c0_i32_1 = arith.constant 0 : i32
    return %c0_i32, %c0_i32_0 : i32, i32
  }
  func.func @transform_12(%arg0: i32) -> (i32, i32, i32) {
    %c0_i32 = arith.constant 0 : i32
    %c0_i32_0 = arith.constant 0 : i32
    %c0_i32_1 = arith.constant 0 : i32
    return %arg0, %c0_i32, %c0_i32_0 : i32, i32, i32
  }
}

</mosaic_0001>

<bundles_post_ra>
// kernel: att_merge_forward.1
= control target key start
LH: loop header
LB: loop body
LE: loop exit
PB: predicated region body
PF: predicated region fallthrough
CT: control target
= control target key end

     0   :  { %s1829_s23 = smov 0   ;;  %s2522_s0 = inlined_call_operand.vmem [shape: f32[2,8,256], index: 0, kind: input, shape index: {}]   ;;  %s2523_s1 = inlined_call_operand.vmem [shape: f32[2,16,64], index: 1, kind: input, shape index: {}]   ;;  %s2524_s2 = inlined_call_operand.vmem [shape: bf16[64,256], index: 2, kind: input, shape index: {}]   ;;  %s2525_s3 = inlined_call_operand.vmem [shape: f32[3,256], index: 3, kind: input, shape index: {}]   ;;  %s2526_s4 = inlined_call_operand.vmem [shape: bf16[16,216], index: 4, kind: input, shape index: {}]   ;;  %s2527_s5 = inlined_call_operand.vmem [shape: f32[16,1], index: 5, kind: input, shape index: {}]   ;;  %s2528_s6 = inlined_call_operand.vmem [shape: f32[16,1], index: 6, kind: input, shape index: {}]   ;;  %s2529_s7 = inlined_call_operand.vmem [shape: bf16[4,144], index: 7, kind: input, shape index: {}]   ;;  %s2530_s8 = inlined_call_operand.vmem [shape: f32[4,1], index: 8, kind: input, shape index: {}]   ;;  %s2531_s9 = inlined_call_operand.vmem [shape: f32[4,1], index: 9, kind: input, shape index: {}]   ;;  %s2532_s10 = inlined_call_operand.vmem [shape: f32[36,1], index: 10, kind: input, shape index: {}]   ;;  %s2533_s11 = inlined_call_operand.<no memory space> [shape: f32[1,1], index: 11, kind: input, shape index: {}]   ;;  %s2534_s12 = inlined_call_operand.vmem [shape: f32[2,8,256], index: 12, kind: output, shape index: {}]  }
   0x1   :  { %v17_v0 = vstv %s2533_s11 }
   0x2   :  { %18 = vst [vmem:[#allocation2] sm:$0x1] %v17_v0 }
   0x3 LB: > { %s1656_s24 = sadd.s32 4294967295, %s1744_s23   ;;  %p1660_p0 = scmp.ge.s32.totalorder %s1744_s23, 1  ;;  %s1744_s23 = sphi %s1829_s23, %s24_s23  }
   0x4   : > { %p374_p1 = scmp.lt.s32.totalorder %s1744_s23, 3 }
   0x6   : > { %p375_p2 = pnand %p1660_p0, %p374_p1 }
   0x7   : > { %p421_p3 = scmp.lt.s32.totalorder (!%p375_p2), %s1656_s24, 1  ;;  %s2541_s28 = smov (!%p375_p2), 2  }
   0x8   : > { %378 = sbr.rel (%p375_p2) target bundleno = 1598 (0x63e), region = 68  ;;  %s2543_s29 = smov (!%p375_p2), 16  }
   0x9   : > { %s1749_s15 = smov (!%p375_p2), 17   ;;  %s2535_s17 = smov (!%p375_p2), 34  }
   0xa   : > { %s2537_s18 = smov (!%p375_p2), 32   ;;  %s2539_s19 = smov (!%p375_p2), 18  }
   0xb   : > { %s1753_s20 = smov (!%p375_p2), 94   ;;  %s1754_s21 = smov (!%p375_p2), 96  }
   0xc   : > { %s1755_s22 = smov (!%p375_p2), 95   ;;  %s1757_s25 = smov (!%p375_p2), 110  }
   0xd   : > { %v1714_v1 = vld [vmem:[%s2524_s2 + $0x34] ss:$8 sps:$4 sm:$0xff]   ;;  %v567_v2 = vlaneseq  ;;  %v1716_v3 = vld [vmem:[%s2524_s2 + $0x30] ss:$8 sps:$4 sm:$0xff]   ;;  %v1746_v4 = vmov 0   ;;  %s2551_s24 = smov (!%p421_p3, %s1656_s24), 1 }
   0xe   : > { %534 = vmatprep.mubr.bf16.mxu0 %v1746_v4  ;;  %1713 = vset.pattern.permute.xlu1 %v1746_v4  ;;  %v1717_v5 = vld [vmem:[%s2524_s2 + $0x24] ss:$8 sps:$4 sm:$0xff]   ;;  %v1719_v6 = vld [vmem:[%s2524_s2 + $0x20] ss:$8 sps:$4 sm:$0xff]   ;;  %v1720_v8 = vld [vmem:[%s2524_s2 + $0x14] ss:$8 sps:$4 sm:$0xff]  }
   0xf   : > { %510 = vmatprep.subr.bf16.mxu0 %v1714_v1  ;;  %1712 = vset.pattern.permute.xlu0 %v1746_v4  ;;  %v1849_v7 = vshrl.u32 %v567_v2, 7  ;;  %s1854_s16 = sshll.u32 %s2551_s24, 4  ;;  %v1859_v9 = vld [vmem:[%s2525_s3] sm:$0x77]  ;;  %v1722_v13 = vld [vmem:[%s2524_s2 + $0x10] ss:$8 sps:$4 sm:$0xff]  }
  0x10   : > { %511 = vmatpush1.bf16.msra.mxu0 %v1716_v3  ;;  %v441_v10 = vpack.c.bf16 %v1859_v9, %v1859_v9  ;;  %v1723_v14 = vld [vmem:[%s2524_s2 + $0x4] ss:$8 sps:$4 sm:$0xff]   ;;  %s430_s26 = scalar_lea.vmem %s2523_s1, %s1854_s16  ;;  %v1725_v18 = vld [vmem:[%s2524_s2] ss:$8 sps:$4 sm:$0xff]   ;;  %vm498_vm0 = vcmask 523264   ;;  %v439_v22 = vcombine.high %v1859_v9, %v1859_v9  ;;  %s425_s14 = scalar_lea.vmem %s2522_s0, %s1854_s16  ;;  %vm644_vm1 = vcmask 277504  }
  0x11   : > { %512 = vmatprep.subr.bf16.mxu0 %v1717_v5  ;;  %v1864_v11 = vsub.s32 0, %v1849_v7  ;;  %v582_v12 = vsub.s32 1, %v1849_v7  ;;  %v447_v19 = vld [vmem:[%s430_s26] sm:$0xff]  ;;  %v448_v20 = vld [vmem:[%s430_s26 + $0x8] sm:$0xff]  ;;  %vm553_vm2 = vcmask 138240   ;;  %vm632_vm3 = vcmask 261120  }
  0x12   : > { %v565_v15 = vpack.i.b16 %v441_v10, %v441_v10  ;;  %v449_v21 = vpack.c.bf16 %v448_v20, %v447_v19  ;;  %v442_v23 = vpack.c.bf16 %v439_v22, %v439_v22  ;;  %v443_v30 = vld [vmem:[%s425_s14] sm:$0xff]  ;;  %v444_v33 = vld [vmem:[%s425_s14 + $0x8] sm:$0xff]  ;;  %vm620_vm4 = vcmask 146432   ;;  %s1756_s24 = smov 111   ;;  %s1758_s26 = smov 112  }
  0x13   : > { %v445_v35 = vpack.c.bf16 %v443_v30, %v443_v30  ;;  %v446_v36 = vpack.c.bf16 %v444_v33, %v444_v33  ;;  %s1759_s11 = smov 127   ;;  %s1760_s27 = smov 126   ;;  %vm594_vm5 = vcmask 15360   ;;  %vm608_vm6 = vcmask 130048  }
  0x14   : > { %513 = vmatpush1.bf16.msra.mxu0 %v1719_v6  ;;  %v583_v16 = vrot.slane %v565_v15, %v582_v12  ;;  %v1878_v17 = vrot.slane %v565_v15, %v1864_v11  ;;  %v572_v24 = vpack.i.b16 %v442_v23, %v442_v23  ;;  %vm967_vm7 = vcmask 719872  }
  0x15   : > { %514 = vmatprep.subr.bf16.mxu0 %v1720_v8  ;;  %vm675_vm8 = vcmask 1031168   ;;  %vm663_vm9 = vcmask 1039360   ;;  %vm690_vm10 = vcmask 916480   ;;  %vm750_vm11 = vcmask 1043456  }
  0x16   : > { %590 = vrot.lane.b32.xlu0 %v583_v16, %s2541_s28  ;;  %604 = vrot.lane.b32.xlu1 %v1878_v17, %s2543_s29  ;;  %v587_v25 = vrot.slane %v572_v24, %v582_v12  ;;  %v1889_v26 = vrot.slane %v572_v24, %v1864_v11  ;;  %vm747_vm12 = vcmask 769024   ;;  %vm735_vm13 = vcmask 777216  }
  0x17   : > { %vm726_vm14 = vcmask 785408   ;;  %vm714_vm15 = vcmask 900096  }
  0x18   : > { %515 = vmatpush1.bf16.msra.mxu0 %v1722_v13 }
  0x19   : > { %516 = vmatprep.subr.bf16.mxu0 %v1723_v14 }
  0x1a   : > { %592 = vrot.lane.b32.xlu0 %v587_v25, %s2541_s28  ;;  %606 = vrot.lane.b32.xlu1 %v1889_v26, %s2543_s29  ;;  %s2545_s28 = smov 16   ;;  %s2546_s29 = smov 2  }
  0x1c   : > { %517 = vmatpush1.bf16.msra.mxu0 %v1725_v18 }
  0x1f   : > { %1675 = vmatmul.mubr.msk.bf16.vlgmr.msra.gmra.mxu0 %vm498_vm0, %v449_v21  ;;  %vm699_vm0 = vcmask 908288  }
  0x88   : > { %v1910_v37 = vpop.permute.xlu0 %590  ;;  %v1912_v38 = vpop.permute.xlu1 %604 }
  0x8c   : > { %v1914_v39 = vpop.permute.xlu0 %592  ;;  %v1916_v40 = vpop.permute.xlu1 %606 }
  0x8d   : > { %v2027_v15 = vsel %vm594_vm5, %v1910_v37, %v1914_v39  ;;  %v2040_v20 = vsel %vm608_vm6, %v1912_v38, %v1916_v40 }
  0xdf   : > { %v536_v27 = vpop.f32.mrf.mxu0 }
  0xe1   : > { %v538_v28 = vpop.f32.mrf.mxu0 }
  0xe3   : > { %v540_v29 = vpop.f32.mrf.mxu0 }
  0xe4   : > { %v545_v31 = vpack.c.bf16 %v540_v29, %v536_v27 }
  0xe5   : > { %v542_v32 = vpop.f32.mrf.mxu0 }
  0xe6   : > { %v546_v34 = vpack.c.bf16 %v542_v32, %v538_v28  ;;  %785 = vrot.lane.b32.xlu0 %v545_v31, %s1749_s15 }
  0xe8   : > { %787 = vrot.lane.b32.xlu1 %v546_v34, %s1749_s15 }
  0xea   : > { %549 = vrot.lane.b32.xlu0 %v445_v35, %s1749_s15 }
  0xec   : > { %551 = vrot.lane.b32.xlu1 %v446_v36, %s1749_s15 }
  0xee   : > { %640 = vrot.lane.b32.xlu0 %v583_v16, %s2535_s17 }
  0xf0   : > { %642 = vrot.lane.b32.xlu1 %v587_v25, %s2535_s17  ;;  %s2547_s17 = smov 18  }
  0xf2   : > { %628 = vrot.lane.b32.xlu0 %v1878_v17, %s2537_s18 }
  0xf4   : > { %630 = vrot.lane.b32.xlu1 %v1889_v26, %s2537_s18  ;;  %s2548_s18 = smov 32  }
  0xf6   : > { %616 = vrot.lane.b32.xlu0 %v583_v16, %s2539_s19 }
  0xf8   : > { %618 = vrot.lane.b32.xlu1 %v587_v25, %s2539_s19  ;;  %s2549_s19 = smov 34  }
 0x158   : > { %v1918_v41 = vpop.permute.xlu0 %785 }
 0x159   : > { %v1995_v6 = vsel %vm553_vm2, 0, %v1918_v41 }
 0x15a   : > { %v1920_v42 = vpop.permute.xlu1 %787  ;;  %v802_v8 = vmul.bf16 %v1995_v6, %v1912_v38  ;;  %v799_v10 = vmul.bf16 %v1995_v6, %v1910_v37 }
 0x15b   : > { %v2009_v12 = vsel %vm553_vm2, %v1920_v42, 0  ;;  %v2019_v14 = vsel %vm553_vm2, %v1918_v41, %v1920_v42 }
 0x15c   : > { %v550_v43 = vpop.permute.xlu0 %549  ;;  %v801_v13 = vmul.bf16 %v2009_v12, %v1914_v39  ;;  %v804_v16 = vmul.bf16 %v2009_v12, %v1916_v40  ;;  %v800_v18 = vmul.bf16 %v2019_v14, %v2027_v15  ;;  %v803_v22 = vmul.bf16 %v2019_v14, %v2040_v20 }
 0x15d   : > { %v1948_v54 = vsel %vm553_vm2, 0, %v550_v43 }
 0x15e   : > { %v552_v44 = vpop.permute.xlu1 %551  ;;  %v654_v1 = vrot.slane %v1948_v54, 4  ;;  %v613_v30 = vmul.bf16 %v1912_v38, %v1948_v54  ;;  %v599_v32 = vmul.bf16 %v1910_v37, %v1948_v54 }
 0x15f   : > { %v1925_v46 = vsel %vm553_vm2, %v552_v44, 0  ;;  %v1930_v48 = vsel %vm553_vm2, %v550_v43, %v552_v44 }
 0x160   : > { %v1922_v45 = vpop.permute.xlu0 %640  ;;  %v655_v59 = vrot.slane %v1930_v48, 4  ;;  %v656_v62 = vrot.slane %v1925_v46, 4  ;;  %v601_v23 = vmul.bf16 %v1914_v39, %v1925_v46  ;;  %v600_v24 = vmul.bf16 %v2027_v15, %v1930_v48 }
 0x161   : > { %v649_v56 = vmul.bf16 %v1922_v45, %v1948_v54  ;;  %v615_v25 = vmul.bf16 %v1916_v40, %v1925_v46  ;;  %v614_v27 = vmul.bf16 %v2040_v20, %v1930_v48  ;;  %v681_v31 = vrot.slane %v613_v30, 4 }
 0x162   : > { %v1927_v47 = vpop.permute.xlu1 %642  ;;  %v811_v33 = vmul.bf16 %v1995_v6, %v1922_v45 }
 0x163   : > { %v651_v49 = vmul.bf16 %v1927_v47, %v1925_v46  ;;  %v1937_v50 = vsel %vm644_vm1, %v1922_v45, %v1927_v47  ;;  %v683_v28 = vrot.slane %v615_v25, 4  ;;  %v682_v29 = vrot.slane %v614_v27, 4 }
 0x164   : > { %v650_v51 = vmul.bf16 %v1937_v50, %v1930_v48  ;;  %v1942_v52 = vpop.permute.xlu0 %628  ;;  %v813_v35 = vmul.bf16 %v2009_v12, %v1927_v47  ;;  %v812_v36 = vmul.bf16 %v2019_v14, %v1937_v50 }
 0x165   : > { %745 = vrot.lane.b32.xlu0 %v651_v49, %s1753_s20  ;;  %v637_v63 = vmul.bf16 %v1942_v52, %v1948_v54  ;;  %v808_v34 = vmul.bf16 %v1995_v6, %v1942_v52  ;;  %v1729_v49 = vld [vmem:[%s2526_s4 + $0x4] ss:$8 sps:$4 sm:$0xff]  }
 0x166   : > { %v1944_v53 = vpop.permute.xlu1 %630  ;;  %743 = vrot.lane.b32.xlu1 %v650_v51, %s1753_s20  ;;  %1679 = vmatprep.mubr.msk.bf16.mxu1 %vm967_vm7, %v1729_v49  ;;  %v1021_v51 = vld [vmem:[%s2527_s5 + $0x8] sm:$0xff] }
 0x167   : > { %v1953_v55 = vsel %vm632_vm3, %v1942_v52, %v1944_v53  ;;  %v639_v58 = vmul.bf16 %v1944_v53, %v1925_v46  ;;  %v810_v44 = vmul.bf16 %v2009_v12, %v1944_v53 }
 0x168   : > { %v638_v57 = vmul.bf16 %v1953_v55, %v1930_v48  ;;  %v1970_v61 = vpop.permute.xlu0 %616  ;;  %v809_v41 = vmul.bf16 %v2019_v14, %v1953_v55 }
 0x169   : > { %v625_v19 = vmul.bf16 %v1970_v61, %v1948_v54  ;;  %v805_v42 = vmul.bf16 %v1995_v6, %v1970_v61 }
 0x16a   : > { %741 = vrot.lane.b32.xlu1 %v649_v56, %s1753_s20  ;;  %722 = vrot.lane.b32.xlu0 %v638_v57, %s1754_s21  ;;  %v1964_v60 = vpop.permute.xlu1 %618  ;;  %v1020_v56 = vld [vmem:[%s2527_s5] sm:$0xff] }
 0x16b   : > { %v1978_v0 = vsel %vm620_vm4, %v1970_v61, %v1964_v60  ;;  %v627_v4 = vmul.bf16 %v1964_v60, %v1925_v46  ;;  %v705_v21 = vrot.slane %v625_v19, 4  ;;  %v807_v43 = vmul.bf16 %v2009_v12, %v1964_v60  ;;  %v1036_v57 = vld [vmem:[%s2528_s6] sm:$0xff] }
 0x16c   : > { %v626_v2 = vmul.bf16 %v1978_v0, %v1930_v48 }
 0x16d   : > { %v707_v5 = vrot.slane %v627_v4, 4 }
 0x16e   : > { %724 = vrot.lane.b32.xlu1 %v639_v58, %s1754_s21  ;;  %731 = vrot.lane.b32.xlu0 %v655_v59, %s1755_s22  ;;  %v706_v3 = vrot.slane %v626_v2, 4  ;;  %v1037_v58 = vld [vmem:[%s2528_s6 + $0x8] sm:$0xff] }
 0x172   : > { %733 = vrot.lane.b32.xlu1 %v656_v62, %s1755_s22  ;;  %720 = vrot.lane.b32.xlu0 %v637_v63, %s1754_s21 }
 0x176   : > { %729 = vrot.lane.b32.xlu1 %v654_v1, %s1755_s22  ;;  %695 = vrot.lane.b32.xlu0 %v1930_v48, %s1756_s24 }
 0x17a   : > { %697 = vrot.lane.b32.xlu1 %v1925_v46, %s1756_s24  ;;  %710 = vrot.lane.b32.xlu0 %v706_v3, %s1757_s25  ;;  %v806_v46 = vmul.bf16 %v2019_v14, %v1978_v0 }
 0x17e   : > { %712 = vrot.lane.b32.xlu1 %v707_v5, %s1757_s25  ;;  %693 = vrot.lane.b32.xlu0 %v1948_v54, %s1756_s24 }
 0x182   : > { %838 = vrot.lane.b32.xlu1 %v802_v8, %s1758_s26  ;;  %816 = vrot.lane.b32.xlu0 %v1995_v6, %s1759_s11 }
 0x186   : > { %820 = vrot.lane.b32.xlu1 %v2009_v12, %s1759_s11  ;;  %827 = vrot.lane.b32.xlu0 %v799_v10, %s1760_s27 }
 0x18a   : > { %831 = vrot.lane.b32.xlu1 %v801_v13, %s1760_s27  ;;  %818 = vrot.lane.b32.xlu0 %v2019_v14, %s1759_s11 }
 0x18e   : > { %842 = vrot.lane.b32.xlu1 %v804_v16, %s1758_s26  ;;  %829 = vrot.lane.b32.xlu0 %v800_v18, %s1760_s27 }
 0x192   : > { %708 = vrot.lane.b32.xlu1 %v705_v21, %s1757_s25  ;;  %840 = vrot.lane.b32.xlu0 %v803_v22, %s1758_s26 }
 0x196   : > { %673 = vrot.lane.b32.xlu1 %v601_v23, %s1760_s27  ;;  %671 = vrot.lane.b32.xlu0 %v600_v24, %s1760_s27 }
 0x19a   : > { %688 = vrot.lane.b32.xlu1 %v683_v28, %s1758_s26  ;;  %686 = vrot.lane.b32.xlu0 %v682_v29, %s1758_s26 }
 0x19e   : > { %684 = vrot.lane.b32.xlu1 %v681_v31, %s1758_s26  ;;  %669 = vrot.lane.b32.xlu0 %v599_v32, %s1760_s27 }
 0x1a2   : > { %661 = vrot.lane.b32.xlu1 %v656_v62, %s1759_s11  ;;  %659 = vrot.lane.b32.xlu0 %v655_v59, %s1759_s11 }
 0x1a6   : > { %887 = vrot.lane.b32.xlu1 %v811_v33, %s1753_s20  ;;  %657 = vrot.lane.b32.xlu0 %v654_v1, %s1759_s11 }
 0x1aa   : > { %880 = vrot.lane.b32.xlu1 %v2009_v12, %s1755_s22  ;;  %878 = vrot.lane.b32.xlu0 %v2019_v14, %s1755_s22 }
 0x1ae   : > { %868 = vrot.lane.b32.xlu1 %v808_v34, %s1754_s21  ;;  %876 = vrot.lane.b32.xlu0 %v1995_v6, %s1755_s22 }
 0x1b2   : > { %891 = vrot.lane.b32.xlu1 %v813_v35, %s1753_s20  ;;  %889 = vrot.lane.b32.xlu0 %v812_v36, %s1753_s20 }
 0x1b6   : > { %870 = vrot.lane.b32.xlu1 %v809_v41, %s1754_s21  ;;  %857 = vrot.lane.b32.xlu0 %v805_v42, %s1757_s25 }
 0x1ba   : > { %861 = vrot.lane.b32.xlu1 %v807_v43, %s1757_s25  ;;  %872 = vrot.lane.b32.xlu0 %v810_v44, %s1754_s21  ;;  %v798_v44 = vmul.bf16 %v2019_v14, %v1889_v26 }
 0x1be   : > { %848 = vrot.lane.b32.xlu1 %v2019_v14, %s1756_s24  ;;  %859 = vrot.lane.b32.xlu0 %v806_v46, %s1757_s25  ;;  %v797_v14 = vmul.bf16 %v1995_v6, %v1878_v17 }
 0x1c2   : > { %846 = vrot.lane.b32.xlu1 %v1995_v6, %s1756_s24  ;;  %850 = vrot.lane.b32.xlu0 %v2009_v12, %s1756_s24 }
 0x1c6   : > { %1029 = vperm.xlu1 %1713, %v1021_v51   ;;  %1024 = vperm.xlu0 %1712, %v1020_v56  }
 0x1ca   : > { %1040 = vperm.xlu1 %1713, %v1036_v57   ;;  %1045 = vperm.xlu0 %1712, %v1037_v58  }
 0x1d7   : > { %v746_v59 = vpop.permute.xlu0 %745 }
 0x1d8   : > { %v2123_v62 = vpop.permute.xlu1 %743 }
 0x1dc   : > { %v2125_v63 = vpop.permute.xlu1 %741  ;;  %v2127_v1 = vpop.permute.xlu0 %722 }
 0x1dd   : > { %v748_v6 = vsel %vm747_vm12, %v2125_v63, %v2123_v62 }
 0x1e0   : > { %v2129_v2 = vpop.permute.xlu1 %724  ;;  %v2131_v3 = vpop.permute.xlu0 %731 }
 0x1e4   : > { %v2133_v4 = vpop.permute.xlu1 %733  ;;  %v2135_v5 = vpop.permute.xlu0 %720 }
 0x1e8   : > { %v2137_v8 = vpop.permute.xlu1 %729  ;;  %v2139_v10 = vpop.permute.xlu0 %695 }
 0x1ec   : > { %v2141_v12 = vpop.permute.xlu1 %697  ;;  %v2143_v13 = vpop.permute.xlu0 %710 }
 0x1f0   : > { %v2145_v16 = vpop.permute.xlu1 %712  ;;  %v2147_v18 = vpop.permute.xlu0 %693 }
 0x1f4   : > { %v839_v19 = vpop.permute.xlu1 %838  ;;  %v817_v21 = vpop.permute.xlu0 %816 }
 0x1f8   : > { %v821_v22 = vpop.permute.xlu1 %820  ;;  %v828_v23 = vpop.permute.xlu0 %827 }
 0x1fc   : > { %v832_v24 = vpop.permute.xlu1 %831  ;;  %v819_v25 = vpop.permute.xlu0 %818 }
 0x1fd   : > { %v823_v33 = vsel %vm663_vm9, %v819_v25, %v821_v22  ;;  %v822_v46 = vsel %vm663_vm9, %v817_v21, %v819_v25 }
 0x1fe   : > { %v902_v49 = vrot.slane %v823_v33, 4  ;;  %v900_v22 = vrot.slane %v822_v46, 4  ;;  %v728_v46 = vsel %vm726_vm14, %v2127_v1, %v2129_v2 }
 0x200   : > { %v843_v27 = vpop.permute.xlu1 %842  ;;  %v830_v28 = vpop.permute.xlu0 %829 }
 0x201   : > { %v833_v29 = vsel %vm675_vm8, %v828_v23, %v830_v28  ;;  %v834_v30 = vsel %vm675_vm8, %v830_v28, %v832_v24  ;;  %v899_v24 = vrot.slane %v798_v44, 4  ;;  %v749_v28 = vsel %vm747_vm12, %v2123_v62, %v746_v59 }
 0x202   : > { %v904_v36 = vrot.slane %v833_v29, 4  ;;  %v906_v41 = vrot.slane %v834_v30, 4  ;;  %v898_v29 = vrot.slane %v797_v14, 4  ;;  %v736_v62 = vsel %vm735_vm13, %v2137_v8, %v2131_v3 }
 0x204   : > { %v709_v31 = vpop.permute.xlu1 %708  ;;  %v841_v32 = vpop.permute.xlu0 %840  ;;  %v905_v25 = vsel %vm750_vm11, %v900_v22, %v904_v36  ;;  %v901_v33 = vsel %vm750_vm11, %v898_v29, %v900_v22 }
 0x205   : > { %v2153_v34 = vsel %vm690_vm10, %v839_v19, %v841_v32  ;;  %v2156_v35 = vsel %vm690_vm10, %v841_v32, %v843_v27  ;;  %v907_v19 = vsel %vm750_vm11, %v902_v49, %v906_v41  ;;  %v903_v27 = vsel %vm750_vm11, %v899_v24, %v902_v49 }
 0x206   : > { %v908_v42 = vrot.slane %v2153_v34, 4  ;;  %v910_v43 = vrot.slane %v2156_v35, 4  ;;  %v950_v49 = vsel %vm750_vm11, %v748_v6, %v898_v29  ;;  %v715_v8 = vsel %vm714_vm15, %v709_v31, %v2143_v13 }
 0x208   : > { %v674_v51 = vpop.permute.xlu1 %673  ;;  %v672_v56 = vpop.permute.xlu0 %671  ;;  %v911_v57 = vsel %vm750_vm11, %v906_v41, %v910_v43  ;;  %v909_v58 = vsel %vm750_vm11, %v904_v36, %v908_v42  ;;  %v954_v36 = vsel %vm750_vm11, %v749_v28, %v899_v24  ;;  %v737_v41 = vsel %vm735_vm13, %v2131_v3, %v2133_v4 }
 0x209   : > { %977 = vmatprep.subr.bf16.mxu1 %v911_v57  ;;  %v781_v63 = vsel %vm750_vm11, %v728_v46, %v737_v41  ;;  %v716_v4 = vsel %vm714_vm15, %v2143_v13, %v2145_v16  ;;  %v727_v57 = vsel %vm726_vm14, %v2135_v5, %v2127_v1  ;;  %v700_v1 = vsel %vm699_vm0, %v2147_v18, %v2139_v10 }
 0x20a   : > { %978 = vmatpush1.bf16.msra.mxu1 %v909_v58  ;;  %v777_v3 = vsel %vm750_vm11, %v727_v57, %v736_v62  ;;  %v677_v24 = vsel %vm675_vm8, %v672_v56, %v674_v51 }
 0x20b   : > { %979 = vmatprep.subr.bf16.mxu1 %v907_v19  ;;  %v701_v19 = vsel %vm699_vm0, %v2139_v10, %v2141_v12  ;;  %v769_v12 = vsel %vm750_vm11, %v700_v1, %v715_v8  ;;  %v579_v10 = vmul.bf16 %v1889_v26, %v1930_v48 }
 0x20c   : > { %v689_v21 = vpop.permute.xlu1 %688  ;;  %v687_v23 = vpop.permute.xlu0 %686  ;;  %v773_v22 = vsel %vm750_vm11, %v701_v19, %v716_v4 }
 0x20d   : > { %v692_v16 = vsel %vm690_vm10, %v687_v23, %v689_v21 }
 0x20e   : > { %980 = vmatpush1.bf16.msra.mxu1 %v905_v25  ;;  %v765_v31 = vsel %vm750_vm11, %v677_v24, %v692_v16 }
 0x20f   : > { %981 = vmatprep.subr.bf16.mxu1 %v903_v27 }
 0x210   : > { %v685_v30 = vpop.permute.xlu1 %684  ;;  %v670_v32 = vpop.permute.xlu0 %669 }
 0x211   : > { %v691_v25 = vsel %vm690_vm10, %v685_v30, %v687_v23  ;;  %v676_v13 = vsel %vm675_vm8, %v670_v32, %v672_v56  ;;  %v578_v56 = vmul.bf16 %v1878_v17, %v1948_v54 }
 0x212   : > { %982 = vmatpush1.bf16.msra.mxu1 %v901_v33  ;;  %v761_v18 = vsel %vm750_vm11, %v676_v13, %v691_v25 }
 0x213   : > { %983 = vmatprep.subr.bf16.mxu1 %v954_v36 }
 0x214   : > { %v662_v59 = vpop.permute.xlu1 %661  ;;  %v660_v44 = vpop.permute.xlu0 %659 }
 0x215   : > { %v665_v21 = vsel %vm663_vm9, %v660_v44, %v662_v59 }
 0x216   : > { %984 = vmatpush1.bf16.msra.mxu1 %v950_v49  ;;  %v757_v23 = vsel %vm750_vm11, %v579_v10, %v665_v21 }
 0x217   : > { %985 = vmatprep.subr.bf16.mxu1 %v781_v63 }
 0x218   : > { %v888_v2 = vpop.permute.xlu1 %887  ;;  %v658_v58 = vpop.permute.xlu0 %657 }
 0x219   : > { %v664_v51 = vsel %vm663_vm9, %v658_v58, %v660_v44 }
 0x21a   : > { %986 = vmatpush1.bf16.msra.mxu1 %v777_v3  ;;  %v753_v48 = vsel %vm750_vm11, %v578_v56, %v664_v51 }
 0x21b   : > { %987 = vmatprep.subr.bf16.mxu1 %v773_v22 }
 0x21c   : > { %v881_v5 = vpop.permute.xlu1 %880  ;;  %v879_v14 = vpop.permute.xlu0 %878 }
 0x21d   : > { %v883_v32 = vsel %vm735_vm13, %v879_v14, %v881_v5 }
 0x21e   : > { %988 = vmatpush1.bf16.msra.mxu1 %v769_v12  ;;  %v926_v59 = vrot.slane %v883_v32, 4  ;;  %v1727_v32 = vld [vmem:[%s2526_s4] ss:$8 sps:$4 sm:$0xff]  }
 0x21f   : > { %989 = vmatprep.subr.bf16.mxu1 %v765_v31 }
 0x220   : > { %v869_v27 = vpop.permute.xlu1 %868  ;;  %v877_v28 = vpop.permute.xlu0 %876 }
 0x221   : > { %v882_v44 = vsel %vm735_vm13, %v877_v28, %v879_v14 }
 0x222   : > { %990 = vmatpush1.bf16.msra.mxu1 %v761_v18  ;;  %v924_v4 = vrot.slane %v882_v44, 4 }
 0x223   : > { %991 = vmatprep.subr.bf16.mxu1 %v757_v23 }
 0x224   : > { %v892_v29 = vpop.permute.xlu1 %891  ;;  %v890_v30 = vpop.permute.xlu0 %889 }
 0x225   : > { %v893_v33 = vsel %vm747_vm12, %v888_v2, %v890_v30  ;;  %v894_v6 = vsel %vm747_vm12, %v890_v30, %v892_v29 }
 0x226   : > { %v928_v36 = vrot.slane %v893_v33, 4  ;;  %v930_v41 = vrot.slane %v894_v6, 4  ;;  %992 = vmatpush1.bf16.msra.mxu1 %v753_v48 }
 0x228   : > { %v871_v46 = vpop.permute.xlu1 %870  ;;  %1678 = vmatprep.subr.msk.bf16.mxu1 %vm750_vm11, %v930_v41  ;;  %v858_v54 = vpop.permute.xlu0 %857  ;;  %v972_v49 = vsel %vm750_vm11, %v928_v36, 0  ;;  %v931_v63 = vsel %vm750_vm11, %v926_v59, %v930_v41  ;;  %v929_v3 = vsel %vm750_vm11, %v924_v4, %v928_v36 }
 0x229   : > { %v874_v62 = vsel %vm726_vm14, %v869_v27, %v871_v46 }
 0x22a   : > { %998 = vmatpush2.bf16.msra.mxu1 %v972_v49  ;;  %v920_v58 = vrot.slane %v874_v62, 4 }
 0x22b   : > { %999 = vmatprep.subr.bf16.mxu1 %v931_v63 }
 0x22c   : > { %v862_v57 = vpop.permute.xlu1 %861  ;;  %v873_v2 = vpop.permute.xlu0 %872  ;;  %v925_v24 = vsel %vm750_vm11, %v920_v58, %v924_v4 }
 0x22d   : > { %v875_v19 = vsel %vm726_vm14, %v871_v46, %v873_v2 }
 0x22e   : > { %v922_v8 = vrot.slane %v875_v19, 4  ;;  %1000 = vmatpush2.bf16.msra.mxu1 %v929_v3 }
 0x230   : > { %v849_v22 = vpop.permute.xlu1 %848  ;;  %v860_v16 = vpop.permute.xlu0 %859  ;;  %v927_v1 = vsel %vm750_vm11, %v922_v8, %v926_v59 }
 0x231   : > { %v863_v5 = vsel %vm714_vm15, %v858_v54, %v860_v16  ;;  %v864_v14 = vsel %vm714_vm15, %v860_v16, %v862_v57  ;;  %1001 = vmatprep.subr.bf16.mxu1 %v927_v1 }
 0x232   : > { %v916_v12 = vrot.slane %v863_v5, 4  ;;  %v918_v25 = vrot.slane %v864_v14, 4  ;;  %1002 = vmatpush2.bf16.msra.mxu1 %v925_v24 }
 0x234   : > { %v847_v13 = vpop.permute.xlu1 %846  ;;  %v851_v31 = vpop.permute.xlu0 %850  ;;  %v923_v21 = vsel %vm750_vm11, %v918_v25, %v922_v8  ;;  %v921_v27 = vsel %vm750_vm11, %v916_v12, %v920_v58 }
 0x235   : > { %v852_v28 = vsel %vm699_vm0, %v847_v13, %v849_v22  ;;  %v853_v10 = vsel %vm699_vm0, %v849_v22, %v851_v31  ;;  %1003 = vmatprep.subr.bf16.mxu1 %v923_v21  ;;  %v1275_v31 = vrot.slane %v1859_v9, %v1864_v11  ;;  %v1278_v21 = vsub.s32 4, %v1849_v7 }
 0x236   : > { %v912_v18 = vrot.slane %v852_v28, 4  ;;  %v914_v51 = vrot.slane %v853_v10, 4  ;;  %1004 = vmatpush2.bf16.msra.mxu1 %v921_v27  ;;  %v1298_v27 = vsub.s32 6, %v1849_v7 }
 0x237   : > { %v1279_v28 = vrot.slane %v1859_v9, %v1278_v21  ;;  %v2353_v10 = vrot.slane %v1275_v31, %v1864_v11 }
 0x238   : > { %v919_v23 = vsel %vm750_vm11, %v914_v51, %v918_v25  ;;  %v917_v56 = vsel %vm750_vm11, %v912_v18, %v916_v12  ;;  %v915_v29 = vsel %vm750_vm11, %v910_v43, %v914_v51  ;;  %v913_v30 = vsel %vm750_vm11, %v908_v42, %v912_v18 }
 0x239   : > { %1005 = vmatprep.subr.bf16.mxu1 %v919_v23  ;;  %v2356_v18 = vrot.slane %v1279_v28, %v1864_v11  ;;  %v1299_v51 = vrot.slane %v1859_v9, %v1298_v27 }
 0x23a   : > { %1006 = vmatpush2.bf16.msra.mxu1 %v917_v56 }
 0x23b   : > { %1007 = vmatprep.subr.bf16.mxu1 %v915_v29 }
 0x23e   : > { %1008 = vmatpush2.bf16.msra.mxu1 %v913_v30 }
 0x241   : > { %1010 = vmatmul.mubr.bf16.vlgmr.msra.gmra.mxu1 %v1727_v32  ;;  %v1030_v33 = vpop.permute.xlu1 %1029  ;;  %v1025_v6 = vpop.permute.xlu0 %1024 }
 0x245   : > { %v1041_v41 = vpop.permute.xlu1 %1040  ;;  %v1046_v34 = vpop.permute.xlu0 %1045 }
 0x301   : > { %v1011_v48 = vpop.f32.mrf.mxu1 }
 0x302   : > { %v1032_v36 = vmul.f32 %v1025_v6, %v1011_v48 }
 0x303   : > { %v1013_v59 = vpop.f32.mrf.mxu1 }
 0x304   : > { %v1033_v35 = vmul.f32 %v1025_v6, %v1013_v59  ;;  %v2252_v43 = vadd.f32 %v1041_v41, %v1032_v36 }
 0x305   : > { %v1015_v44 = vpop.f32.mrf.mxu1 }
 0x306   : > { %v1034_v46 = vmul.f32 %v1030_v33, %v1015_v44  ;;  %v2254_v42 = vadd.f32 %v1041_v41, %v1033_v35  ;;  %v1052_v63 = vmax.f32 %v2252_v43, 0.0 }
 0x307   : > { %v1017_v54 = vpop.f32.mrf.mxu1 }
 0x308   : > { %v1050_v49 = vadd.f32 %v1046_v34, %v1034_v46  ;;  %v1035_v62 = vmul.f32 %v1030_v33, %v1017_v54  ;;  %v1053_v2 = vmax.f32 %v2254_v42, 0.0 }
 0x30a   : > { %v2257_v4 = vmax.f32 %v1050_v49, 0.0  ;;  %v1051_v57 = vadd.f32 %v1046_v34, %v1035_v62 }
 0x30c   : > { %v2260_v58 = vmax.f32 %v1051_v57, 0.0  ;;  %v1056_v19 = vpack.c.bf16 %v2257_v4, %v1052_v63 }
 0x30e   : > { %1060 = vrot.lane.b32.xlu1 %v1056_v19, %s1749_s15  ;;  %v1057_v3 = vpack.c.bf16 %v2260_v58, %v1053_v2 }
 0x310   : > { %1062 = vrot.lane.b32.xlu0 %v1057_v3, %s1749_s15 }
 0x380   : > { %v1061_v8 = vpop.permute.xlu1 %1060 }
 0x381   : > { %v2271_v22 = vsel %vm553_vm2, 0, %v1061_v8 }
 0x382   : > { %v1063_v16 = vpop.permute.xlu0 %1062  ;;  %1127 = vrot.lane.b32.xlu0 %v2271_v22, %s1756_s24  ;;  %1163 = vrot.lane.b32.xlu1 %v2271_v22, %s1755_s22  ;;  %v1083_v14 = vmul.bf16 %v2271_v22, %v1942_v52  ;;  %v1080_v24 = vmul.bf16 %v2271_v22, %v1970_v61  ;;  %v1074_v13 = vmul.bf16 %v2271_v22, %v1910_v37 }
 0x383   : > { %v2278_v1 = vsel %vm553_vm2, %v1061_v8, %v1063_v16  ;;  %v1070_v5 = vsel %vm553_vm2, %v1063_v16, 0 }
 0x384   : > { %v1085_v12 = vmul.bf16 %v1070_v5, %v1944_v53  ;;  %v1084_v25 = vmul.bf16 %v2278_v1, %v1953_v55  ;;  %v1082_v52 = vmul.bf16 %v1070_v5, %v1964_v60  ;;  %v1081_v61 = vmul.bf16 %v2278_v1, %v1978_v0 }
 0x385   : > { %v1077_v53 = vmul.bf16 %v2271_v22, %v1912_v38  ;;  %v1079_v55 = vmul.bf16 %v1070_v5, %v1916_v40  ;;  %v1078_v60 = vmul.bf16 %v2278_v1, %v2040_v20  ;;  %v1076_v0 = vmul.bf16 %v1070_v5, %v1914_v39  ;;  %v2325_v38 = vld.sshfl [vmem:[%s2529_s7] sm:$0x33 pattern:$0x76325410] }
 0x386   : > { %1167 = vrot.lane.b32.xlu0 %v1070_v5, %s1755_s22  ;;  %1165 = vrot.lane.b32.xlu1 %v2278_v1, %s1755_s22  ;;  %v1075_v37 = vmul.bf16 %v2278_v1, %v2027_v15  ;;  %v1195_v39 = vcombine.high %v2325_v38, %v2325_v38  ;;  %v1087_v40 = vmul.bf16 %v2278_v1, %v1937_v50  ;;  %v1294_v50 = vsub.s32 2, %v1849_v7 }
 0x387   : > { %v1088_v15 = vmul.bf16 %v1070_v5, %v1927_v47  ;;  %v1086_v20 = vmul.bf16 %v2271_v22, %v1922_v45  ;;  %v1242_v47 = vld [vmem:[%s2530_s8] sm:$0xf] }
 0x388   : > { %1681 = vmatprep.mubr.msk.bf16.mxu0 %vm608_vm6, %v1195_v39  ;;  %v1250_v45 = vld [vmem:[%s2531_s9] sm:$0xf]  ;;  %v1295_v7 = vrot.slane %v1859_v9, %v1294_v50  ;;  %v2366_v56 = vrot.slane %v1299_v51, %v1294_v50 }
 0x38a   : > { %1153 = vrot.lane.b32.xlu0 %v1083_v14, %s1754_s21  ;;  %1140 = vrot.lane.b32.xlu1 %v1080_v24, %s1757_s25  ;;  %v2364_v23 = vrot.slane %v1295_v7, %v1294_v50 }
 0x38e   : > { %1129 = vrot.lane.b32.xlu0 %v2278_v1, %s1756_s24  ;;  %1131 = vrot.lane.b32.xlu1 %v1070_v5, %s1756_s24 }
 0x392   : > { %1157 = vrot.lane.b32.xlu1 %v1085_v12, %s1754_s21  ;;  %1155 = vrot.lane.b32.xlu0 %v1084_v25, %s1754_s21 }
 0x396   : > { %1144 = vrot.lane.b32.xlu0 %v1082_v52, %s1757_s25  ;;  %1142 = vrot.lane.b32.xlu1 %v1081_v61, %s1757_s25 }
 0x39a   : > { %1104 = vrot.lane.b32.xlu0 %v1074_v13, %s1760_s27  ;;  %1117 = vrot.lane.b32.xlu1 %v1077_v53, %s1758_s26 }
 0x39e   : > { %1121 = vrot.lane.b32.xlu0 %v1079_v55, %s1758_s26  ;;  %1119 = vrot.lane.b32.xlu1 %v1078_v60, %s1758_s26 }
 0x3a2   : > { %1108 = vrot.lane.b32.xlu1 %v1076_v0, %s1760_s27  ;;  %1106 = vrot.lane.b32.xlu0 %v1075_v37, %s1760_s27 }
 0x3a6   : > { %1093 = vrot.lane.b32.xlu1 %v2278_v1, %s1759_s11  ;;  %1095 = vrot.lane.b32.xlu0 %v1070_v5, %s1759_s11 }
 0x3aa   : > { %1091 = vrot.lane.b32.xlu1 %v2271_v22, %s1759_s11  ;;  %1178 = vrot.lane.b32.xlu0 %v1087_v40, %s1753_s20  ;;  %v1073_v40 = vmul.bf16 %v2278_v1, %v1889_v26 }
 0x3ae   : > { %1180 = vrot.lane.b32.xlu1 %v1088_v15, %s1753_s20  ;;  %1176 = vrot.lane.b32.xlu0 %v1086_v20, %s1753_s20  ;;  %v1072_v20 = vmul.bf16 %v2271_v22, %v1878_v17 }
 0x3b2   : > { %1245 = vperm.xlu1 %1713, %v1242_v47   ;;  %1253 = vperm.xlu0 %1712, %v1250_v45  }
 0x3b6   : > { %1326 = vrot.lane.b32.xlu1 %v2353_v10, %s2545_s28  ;;  %1328 = vrot.lane.b32.xlu0 %v2356_v18, %s2545_s28 }
 0x3ba   : > { %1312 = vrot.lane.b32.xlu1 %v2364_v23, %s2546_s29  ;;  %1314 = vrot.lane.b32.xlu0 %v2366_v56, %s2546_s29 }
 0x3be   : > { %1337 = vrot.lane.b32.xlu1 %v2364_v23, %s2547_s17  ;;  %1339 = vrot.lane.b32.xlu0 %v2366_v56, %s2547_s17 }
 0x3f4   : > { %v1128_v9 = vpop.permute.xlu0 %1127  ;;  %v1164_v29 = vpop.permute.xlu1 %1163 }
 0x3f8   : > { %v1168_v30 = vpop.permute.xlu0 %1167  ;;  %v1166_v32 = vpop.permute.xlu1 %1165 }
 0x3f9   : > { %v1169_v33 = vsel %vm735_vm13, %v1164_v29, %v1166_v32  ;;  %v1170_v6 = vsel %vm735_vm13, %v1166_v32, %v1168_v30  ;;  %v1496_v30 = vld [vmem:[%s2532_s10 + $0x8] sm:$0xff]  ;;  %v1497_v32 = vld [vmem:[%s2532_s10 + $0x10] sm:$0xff] }
 0x3fa   : > { %1201 = vmatprep.subr.bf16.mxu0 %v1170_v6 }
 0x3fb   : > { %1202 = vmatpush1.bf16.msra.mxu0 %v1169_v33  ;;  %v1498_v33 = vld [vmem:[%s2532_s10 + $0x18] sm:$0xff] }
 0x3fc   : > { %v1154_v48 = vpop.permute.xlu0 %1153  ;;  %v1141_v36 = vpop.permute.xlu1 %1140 }
 0x400   : > { %v1130_v41 = vpop.permute.xlu0 %1129  ;;  %v1132_v59 = vpop.permute.xlu1 %1131 }
 0x401   : > { %v1134_v19 = vsel %vm699_vm0, %v1130_v41, %v1132_v59  ;;  %v1133_v16 = vsel %vm699_vm0, %v1128_v9, %v1130_v41 }
 0x404   : > { %v1158_v35 = vpop.permute.xlu1 %1157  ;;  %v1156_v44 = vpop.permute.xlu0 %1155 }
 0x405   : > { %v1159_v46 = vsel %vm726_vm14, %v1154_v48, %v1156_v44  ;;  %v1160_v34 = vsel %vm726_vm14, %v1156_v44, %v1158_v35 }
 0x406   : > { %1203 = vmatprep.subr.bf16.mxu0 %v1160_v34 }
 0x407   : > { %1204 = vmatpush1.bf16.msra.mxu0 %v1159_v46 }
 0x408   : > { %v1145_v54 = vpop.permute.xlu0 %1144  ;;  %v1143_v49 = vpop.permute.xlu1 %1142 }
 0x409   : > { %v1146_v62 = vsel %vm714_vm15, %v1141_v36, %v1143_v49  ;;  %v1147_v57 = vsel %vm714_vm15, %v1143_v49, %v1145_v54 }
 0x40a   : > { %1205 = vmatprep.subr.bf16.mxu0 %v1147_v57 }
 0x40b   : > { %1206 = vmatpush1.bf16.msra.mxu0 %v1146_v62 }
 0x40c   : > { %v1105_v3 = vpop.permute.xlu0 %1104  ;;  %1207 = vmatprep.subr.bf16.mxu0 %v1134_v19  ;;  %v1118_v8 = vpop.permute.xlu1 %1117 }
 0x40f   : > { %1208 = vmatpush1.bf16.msra.mxu0 %v1133_v16 }
 0x410   : > { %v1122_v5 = vpop.permute.xlu0 %1121  ;;  %v1120_v14 = vpop.permute.xlu1 %1119 }
 0x411   : > { %v1123_v24 = vsel %vm690_vm10, %v1118_v8, %v1120_v14  ;;  %v1124_v12 = vsel %vm690_vm10, %v1120_v14, %v1122_v5 }
 0x412   : > { %1209 = vmatprep.subr.bf16.mxu0 %v1124_v12 }
 0x413   : > { %1210 = vmatpush1.bf16.msra.mxu0 %v1123_v24 }
 0x414   : > { %v1109_v25 = vpop.permute.xlu1 %1108  ;;  %v1107_v52 = vpop.permute.xlu0 %1106 }
 0x415   : > { %v1110_v61 = vsel %vm675_vm8, %v1105_v3, %v1107_v52  ;;  %v1111_v13 = vsel %vm675_vm8, %v1107_v52, %v1109_v25 }
 0x416   : > { %1211 = vmatprep.subr.bf16.mxu0 %v1111_v13 }
 0x417   : > { %1212 = vmatpush1.bf16.msra.mxu0 %v1110_v61 }
 0x418   : > { %v1094_v53 = vpop.permute.xlu1 %1093  ;;  %v1096_v55 = vpop.permute.xlu0 %1095 }
 0x419   : > { %v1098_v60 = vsel %vm663_vm9, %v1094_v53, %v1096_v55 }
 0x41a   : > { %1213 = vmatprep.subr.bf16.mxu0 %v1098_v60 }
 0x41c   : > { %v1092_v0 = vpop.permute.xlu1 %1091  ;;  %v1179_v37 = vpop.permute.xlu0 %1178 }
 0x41d   : > { %v1097_v39 = vsel %vm663_vm9, %v1092_v0, %v1094_v53 }
 0x41e   : > { %1214 = vmatpush1.bf16.msra.mxu0 %v1097_v39 }
 0x41f   : > { %1215 = vmatprep.subr.bf16.mxu0 %v1073_v40 }
 0x420   : > { %v1181_v15 = vpop.permute.xlu1 %1180  ;;  %v1177_v21 = vpop.permute.xlu0 %1176 }
 0x421   : > { %v1183_v31 = vsel %vm747_vm12, %v1179_v37, %v1181_v15  ;;  %v1182_v50 = vsel %vm747_vm12, %v1177_v21, %v1179_v37 }
 0x422   : > { %1216 = vmatpush1.bf16.msra.mxu0 %v1072_v20 }
 0x423   : > { %1231 = vmatprep.subr.bf16.mxu0 %v1183_v31 }
 0x426   : > { %1232 = vmatpush2.bf16.msra.mxu0 %v1182_v50 }
 0x429   : > { %1234 = vmatmul.mubr.bf16.vlgmr.msra.gmra.mxu0 %v2325_v38  ;;  %v1495_v38 = vld [vmem:[%s2532_s10] sm:$0xff] }
 0x42d   : > { %v1246_v27 = vpop.permute.xlu1 %1245  ;;  %v1254_v26 = vpop.permute.xlu0 %1253 }
 0x431   : > { %v1329_v6 = vpop.permute.xlu0 %1328 }
 0x435   : > { %v1315_v36 = vpop.permute.xlu0 %1314 }
 0x439   : > { %v1340_v59 = vpop.permute.xlu0 %1339 }
 0x4e9   : > { %v1235_v47 = vpop.f32.mrf.mxu0 }
 0x4ea   : > { %v1248_v45 = vmul.f32 %v1246_v27, %v1235_v47 }
 0x4eb   : > { %v1237_v1 = vpop.f32.mrf.mxu0 }
 0x4ec   : > { %v1256_v28 = vadd.f32 %v1254_v26, %v1248_v45  ;;  %v1249_v7 = vmul.f32 %v1246_v27, %v1237_v1 }
 0x4ed   : > { %v1239_v51 = vpop.f32.mrf.mxu0 }
 0x4ee   : > { %v1258_v9 = vmax.f32 %v1256_v28, 0.0  ;;  %v1257_v17 = vadd.f32 %v1254_v26, %v1249_v7  ;;  %v1557_v7 = vld [vmem:[#allocation2] sm:$0x1] }
 0x4ef   : > { %v1240_v22 = vpop.f32.mrf.mxu0 }
 0x4f0   : > { %v1259_v29 = vmax.f32 %v1257_v17, 0.0  ;;  %1262 = vrot.lane.b32.xlu1 %v1258_v9, %s1749_s15 }
 0x4f2   : > { %1264 = vrot.lane.b32.xlu0 %v1259_v29, %s1749_s15 }
 0x4f4   : > { %1349 = vrot.lane.b32.xlu1 %v2353_v10, %s2548_s18 }
 0x4f6   : > { %1351 = vrot.lane.b32.xlu0 %v2356_v18, %s2548_s18 }
 0x4f8   : > { %1361 = vrot.lane.b32.xlu1 %v2364_v23, %s2549_s19  ;;  %v1499_v23 = vld [vmem:[%s2532_s10 + $0x20] sm:$0xf] }
 0x4fa   : > { %1363 = vrot.lane.b32.xlu0 %v2366_v56, %s2549_s19  ;;  %v1327_v56 = vpop.permute.xlu1 %1326 }
 0x4fb   : > { %v1330_v39 = vsel %vm608_vm6, %v1327_v56, %v1329_v6 }
 0x4fc   : > { %1502 = vperm.xlu1 %1713, %v1495_v38  }
 0x4fe   : > { %1507 = vperm.xlu0 %1712, %v1496_v30   ;;  %v1313_v48 = vpop.permute.xlu1 %1312 }
 0x4ff   : > { %v1317_v14 = vsel %vm594_vm5, %v1313_v48, %v1315_v36 }
 0x500   : > { %1512 = vperm.xlu1 %1713, %v1497_v32  }
 0x502   : > { %1522 = vperm.xlu0 %1712, %v1499_v23   ;;  %v1338_v41 = vpop.permute.xlu1 %1337 }
 0x503   : > { %v1342_v15 = vsel %vm620_vm4, %v1338_v41, %v1340_v59 }
 0x504   : > { %1517 = vperm.xlu1 %1713, %v1498_v33  }
 0x562   : > { %v1263_v35 = vpop.permute.xlu1 %1262 }
 0x563   : > { %v2423_v44 = vsel %vm553_vm2, 0.0, %v1263_v35 }
 0x564   : > { %1420 = vrot.lane.b32.xlu0 %v2423_v44, %s1756_s24  ;;  %v1321_v46 = vmul.f32 %v1313_v48, %v2423_v44  ;;  %v1265_v34 = vpop.permute.xlu0 %1264  ;;  %v1375_v54 = vrot.slane %v2423_v44, 4  ;;  %v1334_v12 = vmul.f32 %v1327_v56, %v2423_v44  ;;  %v1346_v61 = vmul.f32 %v1338_v41, %v2423_v44 }
 0x565   : > { %v2432_v62 = vsel %vm553_vm2, %v1263_v35, %v1265_v34  ;;  %v1271_v57 = vsel %vm553_vm2, %v1265_v34, 0.0 }
 0x566   : > { %1392 = vrot.lane.b32.xlu1 %v1321_v46, %s1760_s27  ;;  %v1350_v49 = vpop.permute.xlu1 %1349  ;;  %v1377_v16 = vrot.slane %v1271_v57, 4  ;;  %v1376_v5 = vrot.slane %v2432_v62, 4  ;;  %v1322_v24 = vmul.f32 %v1317_v14, %v2432_v62  ;;  %v1323_v52 = vmul.f32 %v1315_v36, %v1271_v57 }
 0x567   : > { %v1358_v19 = vmul.f32 %v1350_v49, %v2423_v44  ;;  %v1406_v13 = vrot.slane %v1334_v12, 4  ;;  %v1434_v55 = vrot.slane %v1346_v61, 4  ;;  %v1336_v37 = vmul.f32 %v1329_v6, %v1271_v57 }
 0x568   : > { %1378 = vrot.lane.b32.xlu0 %v1375_v54, %s1759_s11  ;;  %v1352_v25 = vpop.permute.xlu0 %1351  ;;  %v1335_v40 = vmul.f32 %v1330_v39, %v2432_v62  ;;  %v1347_v31 = vmul.f32 %v1342_v15, %v2432_v62  ;;  %v1348_v27 = vmul.f32 %v1340_v59, %v1271_v57  ;;  %v1291_v14 = vmul.f32 %v2356_v18, %v2432_v62 }
 0x569   : > { %v1354_v53 = vsel %vm632_vm3, %v1350_v49, %v1352_v25  ;;  %v1360_v0 = vmul.f32 %v1352_v25, %v1271_v57  ;;  %v1408_v20 = vrot.slane %v1336_v37, 4 }
 0x56a   : > { %1422 = vrot.lane.b32.xlu1 %v2432_v62, %s1756_s24  ;;  %v1362_v3 = vpop.permute.xlu1 %1361  ;;  %v1359_v60 = vmul.f32 %v1354_v53, %v2432_v62  ;;  %v1407_v50 = vrot.slane %v1335_v40, 4  ;;  %v1435_v47 = vrot.slane %v1347_v31, 4  ;;  %v1436_v26 = vrot.slane %v1348_v27, 4 }
 0x56b   : > { %v1370_v8 = vmul.f32 %v1362_v3, %v2423_v44 }
 0x56c   : > { %1424 = vrot.lane.b32.xlu0 %v1271_v57, %s1756_s24  ;;  %v1364_v21 = vpop.permute.xlu0 %1363 }
 0x56d   : > { %v1366_v45 = vsel %vm644_vm1, %v1362_v3, %v1364_v21  ;;  %v1372_v28 = vmul.f32 %v1364_v21, %v1271_v57  ;;  %v1290_v3 = vmul.f32 %v2353_v10, %v2423_v44 }
 0x56e   : > { %1451 = vrot.lane.b32.xlu1 %v1358_v19, %s1754_s21  ;;  %v1371_v1 = vmul.f32 %v1366_v45, %v2432_v62 }
 0x570   : > { %1462 = vrot.lane.b32.xlu0 %v1375_v54, %s1755_s22 }
 0x572   : > { %1476 = vrot.lane.b32.xlu1 %v1370_v8, %s1753_s20 }
 0x574   : > { %1382 = vrot.lane.b32.xlu0 %v1377_v16, %s1759_s11 }
 0x576   : > { %1380 = vrot.lane.b32.xlu1 %v1376_v5, %s1759_s11 }
 0x577   : > { %v1503_v51 = vpop.permute.xlu1 %1502 }
 0x578   : > { %1394 = vrot.lane.b32.xlu0 %v1322_v24, %s1760_s27 }
 0x579   : > { %v1508_v9 = vpop.permute.xlu0 %1507 }
 0x57a   : > { %1396 = vrot.lane.b32.xlu1 %v1323_v52, %s1760_s27 }
 0x57b   : > { %v1513_v17 = vpop.permute.xlu1 %1512 }
 0x57c   : > { %1409 = vrot.lane.b32.xlu0 %v1406_v13, %s1758_s26 }
 0x57d   : > { %v2472_v22 = vpop.permute.xlu0 %1522 }
 0x57e   : > { %1437 = vrot.lane.b32.xlu1 %v1434_v55, %s1757_s25 }
 0x57f   : > { %v1518_v29 = vpop.permute.xlu1 %1517 }
 0x580   : > { %1453 = vrot.lane.b32.xlu0 %v1359_v60, %s1754_s21 }
 0x582   : > { %1455 = vrot.lane.b32.xlu1 %v1360_v0, %s1754_s21 }
 0x584   : > { %1466 = vrot.lane.b32.xlu0 %v1377_v16, %s1755_s22 }
 0x586   : > { %1464 = vrot.lane.b32.xlu1 %v1376_v5, %s1755_s22  ;;  %s435_s22 = scalar_lea.vmem %s2534_s12, %s1854_s16 }
 0x588   : > { %1413 = vrot.lane.b32.xlu0 %v1408_v20, %s1758_s26 }
 0x58a   : > { %1411 = vrot.lane.b32.xlu1 %v1407_v50, %s1758_s26 }
 0x58c   : > { %1439 = vrot.lane.b32.xlu0 %v1435_v47, %s1757_s25 }
 0x58e   : > { %1441 = vrot.lane.b32.xlu1 %v1436_v26, %s1757_s25 }
 0x590   : > { %1478 = vrot.lane.b32.xlu0 %v1371_v1, %s1753_s20 }
 0x592   : > { %1480 = vrot.lane.b32.xlu1 %v1372_v28, %s1753_s20 }
 0x594   : > { %1560 = vperm.xlu0 %1712, %v1557_v7  }
 0x5d6   : > { %v1421_v38 = vpop.permute.xlu0 %1420 }
 0x5d8   : > { %v1393_v30 = vpop.permute.xlu1 %1392 }
 0x5da   : > { %v1379_v32 = vpop.permute.xlu0 %1378 }
 0x5dc   : > { %v1423_v23 = vpop.permute.xlu1 %1422 }
 0x5dd   : > { %v1427_v12 = vsel %vm699_vm0, %v1421_v38, %v1423_v23 }
 0x5de   : > { %v1425_v33 = vpop.permute.xlu0 %1424 }
 0x5df   : > { %v1428_v31 = vsel %vm699_vm0, %v1423_v23, %v1425_v33 }
 0x5e0   : > { %v1452_v56 = vpop.permute.xlu1 %1451 }
 0x5e2   : > { %v1463_v6 = vpop.permute.xlu0 %1462 }
 0x5e4   : > { %v1477_v48 = vpop.permute.xlu1 %1476 }
 0x5e6   : > { %v1383_v36 = vpop.permute.xlu0 %1382 }
 0x5e8   : > { %v1381_v41 = vpop.permute.xlu1 %1380 }
 0x5e9   : > { %v1385_v57 = vsel %vm663_vm9, %v1379_v32, %v1381_v41  ;;  %v1386_v16 = vsel %vm663_vm9, %v1381_v41, %v1383_v36 }
 0x5ea   : > { %v1395_v59 = vpop.permute.xlu0 %1394  ;;  %v1487_v5 = vsel %vm750_vm11, %v1290_v3, %v1385_v57  ;;  %v1488_v25 = vsel %vm750_vm11, %v1291_v14, %v1386_v16 }
 0x5eb   : > { %v1525_v52 = vmul.f32 %v1503_v51, %v1487_v5  ;;  %v1399_v53 = vsel %vm675_vm8, %v1393_v30, %v1395_v59  ;;  %v1526_v21 = vmul.f32 %v1503_v51, %v1488_v25 }
 0x5ec   : > { %v1397_v35 = vpop.permute.xlu1 %1396 }
 0x5ed   : > { %v1400_v10 = vsel %vm675_vm8, %v1395_v59, %v1397_v35 }
 0x5ee   : > { %v1410_v46 = vpop.permute.xlu0 %1409 }
 0x5f0   : > { %v1438_v34 = vpop.permute.xlu1 %1437 }
 0x5f2   : > { %v1454_v54 = vpop.permute.xlu0 %1453 }
 0x5f3   : > { %v1458_v60 = vsel %vm726_vm14, %v1452_v56, %v1454_v54 }
 0x5f4   : > { %v1456_v49 = vpop.permute.xlu1 %1455 }
 0x5f5   : > { %v1459_v47 = vsel %vm726_vm14, %v1454_v54, %v1456_v49 }
 0x5f6   : > { %v1467_v19 = vpop.permute.xlu0 %1466 }
 0x5f8   : > { %v1465_v8 = vpop.permute.xlu1 %1464 }
 0x5f9   : > { %v1469_v61 = vsel %vm735_vm13, %v1463_v6, %v1465_v8  ;;  %v1470_v18 = vsel %vm735_vm13, %v1465_v8, %v1467_v19 }
 0x5fa   : > { %v1414_v24 = vpop.permute.xlu0 %1413  ;;  %v1493_v39 = vsel %vm750_vm11, %v1458_v60, %v1469_v61  ;;  %v1494_v28 = vsel %vm750_vm11, %v1459_v47, %v1470_v18 }
 0x5fb   : > { %v1531_v7 = vmul.f32 %v1518_v29, %v1493_v39  ;;  %v1532_v6 = vmul.f32 %v1518_v29, %v1494_v28 }
 0x5fc   : > { %v1412_v13 = vpop.permute.xlu1 %1411 }
 0x5fd   : > { %v1416_v44 = vsel %vm690_vm10, %v1410_v46, %v1412_v13  ;;  %v1417_v55 = vsel %vm690_vm10, %v1412_v13, %v1414_v24 }
 0x5fe   : > { %v1489_v62 = vsel %vm750_vm11, %v1399_v53, %v1416_v44  ;;  %v1490_v0 = vsel %vm750_vm11, %v1400_v10, %v1417_v55  ;;  %v1440_v37 = vpop.permute.xlu0 %1439 }
 0x5ff   : > { %v1527_v40 = vmul.f32 %v1508_v9, %v1489_v62  ;;  %v1528_v15 = vmul.f32 %v1508_v9, %v1490_v0  ;;  %v1444_v20 = vsel %vm714_vm15, %v1438_v34, %v1440_v37  ;;  %v1581_v62 = vsub.f32 %v1052_v63, %v2257_v4 }
 0x600   : > { %v1491_v50 = vsel %vm750_vm11, %v1427_v12, %v1444_v20  ;;  %v1442_v27 = vpop.permute.xlu1 %1441 }
 0x601   : > { %v1535_v45 = vadd.f32 %v1527_v40, %v1525_v52  ;;  %v1529_v26 = vmul.f32 %v1513_v17, %v1491_v50  ;;  %v1445_v1 = vsel %vm714_vm15, %v1440_v37, %v1442_v27  ;;  %v1546_v30 = vadd.f32 %v1528_v15, %v1526_v21 }
 0x602   : > { %v1492_v38 = vsel %vm750_vm11, %v1428_v31, %v1445_v1  ;;  %v1479_v9 = vpop.permute.xlu0 %1478 }
 0x603   : > { %v1536_v32 = vadd.f32 %v1535_v45, %v1529_v26  ;;  %v1530_v56 = vmul.f32 %v1513_v17, %v1492_v38  ;;  %v1483_v51 = vsel %vm747_vm12, %v1477_v48, %v1479_v9 }
 0x604   : > { %v1533_v23 = vmul.f32 %v2472_v22, %v1483_v51  ;;  %v1481_v33 = vpop.permute.xlu1 %1480 }
 0x605   : > { %v1547_v36 = vadd.f32 %v1546_v30, %v1530_v56  ;;  %v1537_v41 = vadd.f32 %v1536_v32, %v1531_v7  ;;  %v1484_v59 = vsel %vm747_vm12, %v1479_v9, %v1481_v33 }
 0x606   : > { %v1538_v35 = vsel %vm750_vm11, %v1533_v23, 0.0  ;;  %v1534_v46 = vmul.f32 %v2472_v22, %v1484_v59 }
 0x607   : > { %v1539_v34 = vadd.f32 %v1538_v35, %v1537_v41  ;;  %v1548_v54 = vadd.f32 %v1547_v36, %v1532_v6 }
 0x608   : > { %v1549_v49 = vsel %vm750_vm11, %v1534_v46, 0.0 }
 0x609   : > { %v1540_v57 = vrot.slane %v1539_v34, 4  ;;  %v1550_v17 = vadd.f32 %v1549_v49, %v1548_v54 }
 0x60b   : > { %v1541_v19 = vadd.f32 %v1540_v57, %v1539_v34  ;;  %v1551_v48 = vrot.slane %v1550_v17, 4 }
 0x60d   : > { %v1552_v3 = vadd.f32 %v1551_v48, %v1550_v17  ;;  %v1542_v8 = vrot.slane %v1541_v19, 2 }
 0x60f   : > { %v1543_v16 = vadd.f32 %v1542_v8, %v1541_v19  ;;  %v1553_v29 = vrot.slane %v1552_v3, 2  ;;  %v1561_v5 = vpop.permute.xlu0 %1560 }
 0x610   : > { %v1566_v52 = vrot.slane %v1561_v5, %v1864_v11  ;;  %v1582_v11 = vsub.f32 %v1053_v2, %v2260_v58 }
 0x611   : > { %v1544_v14 = vrot.slane %v1543_v16, 1  ;;  %v1554_v24 = vadd.f32 %v1553_v29, %v1552_v3 }
 0x613   : > { %v1545_v12 = vadd.f32 %v1544_v14, %v1543_v16  ;;  %v1555_v25 = vrot.slane %v1554_v24, 1 }
 0x615   : > { %v1556_v22 = vadd.f32 %v1555_v25, %v1554_v24  ;;  %v1567_v61 = vadd.f32 %v1566_v52, %v1545_v12 }
 0x617   : > { %v1568_v13 = vadd.f32 %v1566_v52, %v1556_v22  ;;  %v1682_v53 = vmul.f32 -1.442695, %v1567_v61 }
 0x619   : > { %1730 = vpow2.f32 %v1682_v53  ;;  %v1683_v10 = vmul.f32 -1.442695, %v1568_v13 }
 0x61b   : > { %1732 = vpow2.f32 %v1683_v10 }
 0x626   : > { %v1731_v44 = vpop.eup %1730 }
 0x627   : > { %v1575_v55 = vadd.f32 1.0, %v1731_v44 }
 0x628   : > { %v1733_v60 = vpop.eup %1732 }
 0x629   : > { %v1576_v18 = vadd.f32 1.0, %v1733_v60  ;;  %1734 = vrcp.f32 %v1575_v55 }
 0x62b   : > { %1736 = vrcp.f32 %v1576_v18 }
 0x636   : > { %v1735_v0 = vpop.eup %1734 }
 0x637   : > { %v1583_v37 = vmul.f32 %v1735_v0, %v1581_v62 }
 0x638   : > { %v1737_v39 = vpop.eup %1736 }
 0x639   : > { %v1584_v40 = vmul.f32 %v1737_v39, %v1582_v11  ;;  %v1585_v15 = vadd.f32 %v1583_v37, %v2257_v4 }
 0x63b   : > { %v1586_v20 = vadd.f32 %v1584_v40, %v2260_v58  ;;  %1587 = vst [vmem:[%s435_s22] sm:$0xff] %v1585_v15 }
 0x63d   : > { %1588 = vst [vmem:[%s435_s22 + $0x8] sm:$0xff] %v1586_v20 }
 0x63e PF: > { %s24_s23 = sadd.s32 1, %s1744_s23  }
 0x63f   : > { %p21_p4 = scmp.ge.s32.totalorder %s24_s23, 4  }
 0x641   :  { %23 = sbr.rel (!%p21_p4) target bundleno = 3 (0x3), region = 101 }

</bundles_post_ra>
